<compile_context>
chip_gen: v7x
topology: tpu7x:2x2x1
jax: 0.10.0
libtpu: 0.0.40
codegen_flags: <defaults>
</compile_context>

<pallas_src>
import jax
import jax.numpy as jnp
from jax.experimental import pallas as pl
from jax.experimental.pallas import tpu as pltpu

EMB = 16                 # args.embed_size
HID = 32                 # args.hidden_size
ALPHA = 0.1              # args.relu (LeakyReLU negative slope)
FEATURE = "all"          # args.feature
MLP_IN = EMB * 4 + 32    # 96 node-feature width for feature == "all"
LANES = 128
OUT_PAD = 128            # lane-dense padded MLP output width (logits in cols 0:2)

# weight-slab row offsets (all multiples of the bf16 sublane tile)
_OFF_WIH = 0             # [32,128]  url(fwd | bwd-reversed) -> gates
_OFF_WHH = 32            # [32,128]  h(fwd|bwd) -> gates (block-diagonal)
_OFF_FCW = 64            # [32,128]  fc_lstm   (valid lanes 0:16)
_OFF_W1A = 96            # [128,128] mlp W1 src half (valid rows 0:96, lanes 0:32)
_OFF_W1B = 224           # [128,128] mlp W1 dst half
_OFF_W2 = 352            # [128,128] mlp W2 (valid rows/lanes 0:32)
_OFF_W3 = 480            # [128,128] mlp W3 (valid rows 0:32, lanes 0:2)
_SLAB_ROWS = 608

_VMEM = pl.BlockSpec(memory_space=pltpu.MemorySpace.VMEM)


# ------------------------------------------------------------------ kernel

def fused_forward_kernel(url2_ref, mask2_ref, wslab_ref, bias_ref, other_ref,
                         src_ref, dst_ref, out_ref):
    N = other_ref.shape[0]
    TN = url2_ref.shape[0]
    T = TN // N
    E2 = 2 * EMB                       # 32: per-gate width (fwd|bwd interleaved)
    n_edges = src_ref.shape[0]
    bf16 = jnp.bfloat16
    f32 = jnp.float32

    # static sublane views of the packed bf16 weight slab (loaded once)
    w_in = wslab_ref[_OFF_WIH:_OFF_WIH + 32, :]
    w_hh = wslab_ref[_OFF_WHH:_OFF_WHH + 32, :]
    w_fc = wslab_ref[_OFF_FCW:_OFF_FCW + 32, :]
    w_1a = wslab_ref[_OFF_W1A:_OFF_W1A + 128, :]
    w_1b = wslab_ref[_OFF_W1B:_OFF_W1B + 128, :]
    w_2 = wslab_ref[_OFF_W2:_OFF_W2 + 128, :]
    w_3 = wslab_ref[_OFF_W3:_OFF_W3 + 128, :]

    b_gate = bias_ref[0:1, :]
    b_fc = bias_ref[1:2, :]
    b_1 = bias_ref[2:3, :]
    b_2 = bias_ref[3:4, :]
    b_3 = bias_ref[4:5, :]

    # hoisted input projection of BOTH directions (bwd lanes pre-time-reversed
    # in the wrapper), bias folded in once; kept in registers: [T*N, 128]
    gx = jnp.dot(url2_ref[...], w_in, preferred_element_type=f32) + b_gate
    m_all = mask2_ref[...]                                   # [T*N, 32] 0/1 f32

    # gate lane layout (both dirs interleaved): i 0:32 | f 32:64 | o 64:96 | g 96:128
    h = jnp.zeros((N, E2), f32)                              # [h_f | h_b]
    c = jnp.zeros((N, E2), f32)
    for t in range(T):                                       # fully unrolled, static slices
        gates = gx[t * N:(t + 1) * N, :] + jnp.dot(
            h.astype(bf16), w_hh, preferred_element_type=f32)          # [N,128]
        sig = jax.nn.sigmoid(gates)                          # one wide EUP pass
        g = jnp.tanh(gates[:, 3 * E2:])                      # [N,32]
        i_g = sig[:, 0:E2]
        f_g = sig[:, E2:2 * E2]
        o_g = sig[:, 2 * E2:3 * E2]
        c_new = f_g * c + i_g * g
        h_new = o_g * jnp.tanh(c_new)
        m = m_all[t * N:(t + 1) * N, :]                      # mask lerp (pack_padded emu)
        h = h + m * (h_new - h)
        c = c + m * (c_new - c)

    # fc_lstm + LeakyReLU (dropout = identity in eval mode); valid lanes 0:16
    h_fc = jnp.dot(h.astype(bf16), w_fc, preferred_element_type=f32) + b_fc
    h_fc = jnp.where(h_fc >= 0, h_fc, ALPHA * h_fc)

    # node features, 128-lane padded: h_fc in lanes 0:16, other feats in 16:96
    node = (h_fc + other_ref[...]).astype(bf16)

    # edge MLP; src/dst gather via one combined one-hot matmul on the MXU:
    #   table rows 0:N   = node @ W1a  (src half of Linear #1)
    #   table rows N:2N  = node @ W1b  (dst half)
    n_src = jnp.dot(node, w_1a, preferred_element_type=f32)  # [N,128]
    n_dst = jnp.dot(node, w_1b, preferred_element_type=f32)
    table = jnp.concatenate([n_src, n_dst], axis=0).astype(bf16)       # [2N,128]
    iota = jax.lax.broadcasted_iota(jnp.int32, (n_edges, 2 * N), 1)
    oh = ((iota == src_ref[...]) | (iota == dst_ref[...] + N)).astype(bf16)
    h1 = jnp.dot(oh, table, preferred_element_type=f32) + b_1
    h1 = jnp.where(h1 >= 0, h1, ALPHA * h1)
    h2 = jnp.dot(h1.astype(bf16), w_2, preferred_element_type=f32) + b_2
    h2 = jnp.where(h2 >= 0, h2, ALPHA * h2)
    # lane-dense store: [n_edges, 128]; real logits are cols 0:2 (rest zeros)
    out_ref[...] = jnp.dot(h2.astype(bf16), w_3, preferred_element_type=f32) + b_3


def fused_forward(kp, url2_tm, mask2_tm, other_pad, src, dst):
    n_edges = src.shape[0]
    out = pl.pallas_call(
        fused_forward_kernel,
        out_shape=jax.ShapeDtypeStruct((n_edges, OUT_PAD), jnp.float32),
        in_specs=[_VMEM] * 7,
        out_specs=_VMEM,
    )(url2_tm, mask2_tm, kp["w_slab"], kp["b_slab"], other_pad,
      src.astype(jnp.int32).reshape(n_edges, 1),
      dst.astype(jnp.int32).reshape(n_edges, 1))
    return out[:, :2]


# ------------------------------------------------------------------ params

def init_params(key):
    ks = iter(jax.random.split(key, 24))

    def u(shape, scale=0.1):
        return jax.random.uniform(next(ks), shape, jnp.float32, -scale, scale)

    # Logical (PyTorch-layout) parameters.
    p = {
        "embed_url": u((128, EMB)),
        "embed_category": u((101, EMB)),
        "embed_country": u((92, EMB)),
        "embed_sl": u((6, EMB)),
        # bidirectional LSTM, PyTorch layout [4E, E], gate order i,f,g,o
        "lstm_w_ih_f": u((4 * EMB, EMB)), "lstm_w_hh_f": u((4 * EMB, EMB)),
        "lstm_b_ih_f": u((4 * EMB,)),     "lstm_b_hh_f": u((4 * EMB,)),
        "lstm_w_ih_b": u((4 * EMB, EMB)), "lstm_w_hh_b": u((4 * EMB, EMB)),
        "lstm_b_ih_b": u((4 * EMB,)),     "lstm_b_hh_b": u((4 * EMB,)),
        "fc_lstm_w": u((EMB, 2 * EMB)),   "fc_lstm_b": u((EMB,)),
        "mlp_w1": u((HID, 2 * MLP_IN)),   "mlp_b1": u((HID,)),
        "mlp_w2": u((HID, HID)),          "mlp_b2": u((HID,)),
        "mlp_w3": u((2, HID)),            "mlp_b3": u((2,)),
    }
    p["kernel"] = pack_params(p)
    return p


def _interleave_gate_cols(gf, gb):
    """[..., 4E] in PyTorch gate order (i,f,g,o) per direction ->
    [..., 8E] in kernel gate-lane layout [i_f,i_b | f_f,f_b | o_f,o_b | g_f,g_b]."""
    E = EMB
    blocks = []
    for k in (0, 1, 3, 2):            # i, f, o, g
        blocks.append(gf[..., k * E:(k + 1) * E])
        blocks.append(gb[..., k * E:(k + 1) * E])
    return jnp.concatenate(blocks, axis=-1)


def _pad2(w, rows, cols=LANES):
    out = jnp.zeros((rows, cols), jnp.float32)
    return out.at[:w.shape[0], :w.shape[1]].set(w)


def pack_params(p):
    """Pack logical params into two slabs: [608,128] bf16 weights + [8,128] f32 biases."""
    E = EMB
    zf = jnp.zeros((E, 4 * E), jnp.float32)
    # input projection, both directions stacked on the contraction axis:
    # rows 0:16 consume url(t) (fwd), rows 16:32 consume url(T-1-t) (bwd, pre-reversed)
    wih2 = jnp.concatenate(
        [_interleave_gate_cols(p["lstm_w_ih_f"].T, zf),
         _interleave_gate_cols(zf, p["lstm_w_ih_b"].T)], axis=0)        # [32,128]
    # block-diagonal recurrent weight: one h[N,32] @ [32,128] matmul per step
    whh2 = jnp.concatenate(
        [_interleave_gate_cols(p["lstm_w_hh_f"].T, zf),
         _interleave_gate_cols(zf, p["lstm_w_hh_b"].T)], axis=0)        # [32,128]
    b_gate = _interleave_gate_cols(
        (p["lstm_b_ih_f"] + p["lstm_b_hh_f"])[None, :],
        (p["lstm_b_ih_b"] + p["lstm_b_hh_b"])[None, :])                 # [1,128]

    w1T = p["mlp_w1"].T                                                 # [192, HID]
    w_slab = jnp.concatenate([
        wih2,                                  # rows   0: 32
        whh2,                                  # rows  32: 64
        _pad2(p["fc_lstm_w"].T, 32),           # rows  64: 96   [32,16] -> [32,128]
        _pad2(w1T[:MLP_IN], 128),              # rows  96:224   src half of Linear #1
        _pad2(w1T[MLP_IN:], 128),              # rows 224:352   dst half
        _pad2(p["mlp_w2"].T, 128),             # rows 352:480
        _pad2(p["mlp_w3"].T, 128),             # rows 480:608   logits in lanes 0:2
    ], axis=0).astype(jnp.bfloat16)
    assert w_slab.shape == (_SLAB_ROWS, LANES)

    b_slab = jnp.concatenate([
        b_gate,                                # row 0: fused gate bias (b_ih + b_hh)
        _pad2(p["fc_lstm_b"][None, :], 1),     # row 1
        _pad2(p["mlp_b1"][None, :], 1),        # row 2
        _pad2(p["mlp_b2"][None, :], 1),        # row 3
        _pad2(p["mlp_b3"][None, :], 1),        # row 4
        jnp.zeros((3, LANES), jnp.float32),    # rows 5:8 padding
    ], axis=0)                                 # [8,128] f32

    return {"w_slab": w_slab, "b_slab": b_slab}


# ------------------------------------------------------------------ forward

def forward(params, src, dst, inputs_s, inputs_sm, inputs_c, inputs_co,
            inputs_sl, inputs_ip):
    N, T = inputs_s.shape
    mask = inputs_sm.astype(jnp.float32)                     # [N,T] prefix-valid mask
    # (lengths = inputs_sm.sum(1) is implied by the mask; assumes lengths >= 1)

    url_emb = params["embed_url"][inputs_s]                  # [N, T, EMB]
    url_f = jnp.transpose(url_emb, (1, 0, 2))                # [T, N, EMB] time-major
    url_b = jnp.flip(url_f, axis=0)                          # time-reversed for bwd dir
    url2_tm = jnp.concatenate([url_f, url_b], axis=-1
                              ).reshape(T * N, 2 * EMB).astype(jnp.bfloat16)

    mask_f = jnp.transpose(mask, (1, 0))[:, :, None]         # [T, N, 1]
    mask_b = jnp.flip(mask_f, axis=0)
    mask2_tm = jnp.concatenate(
        [jnp.broadcast_to(mask_f, (T, N, EMB)),
         jnp.broadcast_to(mask_b, (T, N, EMB))], axis=-1).reshape(T * N, 2 * EMB)

    cat_emb = params["embed_category"][inputs_c[:, 0]]       # .squeeze(1)
    country_emb = params["embed_country"][inputs_co[:, 0]]
    sec_emb = params["embed_sl"][inputs_sl[:, 0]]
    ip_emb = inputs_ip.astype(jnp.float32)                   # [N, 32]

    # TODO(synk): only feature == "all" is wired through the fused kernel; other
    #             feature modes would change other_pad / the W1 split width.
    other = jnp.concatenate([cat_emb, country_emb, sec_emb, ip_emb], axis=1)  # [N,80]
    # lane-shift into slots 16:96 of a 128-lane slab (lanes 0:16 belong to h_fc)
    other_pad = jnp.zeros((N, LANES), jnp.float32
                          ).at[:, EMB:EMB + other.shape[1]].set(other)

    out = fused_forward(params["kernel"], url2_tm, mask2_tm, other_pad, src, dst)
    return out, None


# ------------------------------------------------------------------ main

if __name__ == "__main__":
    key = jax.random.PRNGKey(0)
    k_param, k_s, k_len, k_c, k_co, k_sl, k_ip, k_src, k_dst = jax.random.split(key, 9)

    params = init_params(k_param)

    N, T, E_EDGES = 8, 8, 8

    inputs_s = jax.random.randint(k_s, (N, T), 0, 128)                  # url token ids
    lengths = jax.random.randint(k_len, (N,), 1, T + 1)                 # 1..T
    inputs_sm = (jnp.arange(T)[None, :] < lengths[:, None]).astype(jnp.int32)
    inputs_c = jax.random.randint(k_c, (N, 1), 0, 101)
    inputs_co = jax.random.randint(k_co, (N, 1), 0, 92)
    inputs_sl = jax.random.randint(k_sl, (N, 1), 0, 6)
    inputs_ip = jax.random.normal(k_ip, (N, 32), jnp.float32)
    src = jax.random.randint(k_src, (E_EDGES,), 0, N)
    dst = jax.random.randint(k_dst, (E_EDGES,), 0, N)

    out, _ = jax.jit(forward)(params, src, dst, inputs_s, inputs_sm,
                              inputs_c, inputs_co, inputs_sl, inputs_ip)
    out = jax.block_until_ready(out)
    assert out.shape == (E_EDGES, 2) and out.dtype == jnp.float32
    print("KERNEL_OK")
</pallas_src>

<mosaic_0001>
module attributes {stable_mosaic.version = 11 : i64} {
  func.func @fused_forward_kernel(%arg0: memref<64x32xbf16, #tpu.memory_space<vmem>>, %arg1: memref<64x32xf32, #tpu.memory_space<vmem>>, %arg2: memref<608x128xbf16, #tpu.memory_space<vmem>>, %arg3: memref<8x128xf32, #tpu.memory_space<vmem>>, %arg4: memref<8x128xf32, #tpu.memory_space<vmem>>, %arg5: memref<8x1xi32, #tpu.memory_space<vmem>>, %arg6: memref<8x1xi32, #tpu.memory_space<vmem>>, %arg7: memref<8x128xf32, #tpu.memory_space<vmem>>) attributes {dimension_semantics = [], scalar_prefetch = 0 : i64, scratch_operands = 0 : i64, tpu.core_type = #tpu.core_type<tc>} {
    %c0 = arith.constant 0 : index
    %c0_0 = arith.constant 0 : index
    %0 = vector.load %arg2[%c0, %c0_0] : memref<608x128xbf16, #tpu.memory_space<vmem>>, vector<32x128xbf16>
    %c32 = arith.constant 32 : index
    %c0_1 = arith.constant 0 : index
    %1 = vector.load %arg2[%c32, %c0_1] : memref<608x128xbf16, #tpu.memory_space<vmem>>, vector<32x128xbf16>
    %c64 = arith.constant 64 : index
    %c0_2 = arith.constant 0 : index
    %2 = vector.load %arg2[%c64, %c0_2] : memref<608x128xbf16, #tpu.memory_space<vmem>>, vector<32x128xbf16>
    %c96 = arith.constant 96 : index
    %c0_3 = arith.constant 0 : index
    %3 = vector.load %arg2[%c96, %c0_3] : memref<608x128xbf16, #tpu.memory_space<vmem>>, vector<128x128xbf16>
    %c224 = arith.constant 224 : index
    %c0_4 = arith.constant 0 : index
    %4 = vector.load %arg2[%c224, %c0_4] : memref<608x128xbf16, #tpu.memory_space<vmem>>, vector<128x128xbf16>
    %c352 = arith.constant 352 : index
    %c0_5 = arith.constant 0 : index
    %5 = vector.load %arg2[%c352, %c0_5] : memref<608x128xbf16, #tpu.memory_space<vmem>>, vector<128x128xbf16>
    %c480 = arith.constant 480 : index
    %c0_6 = arith.constant 0 : index
    %6 = vector.load %arg2[%c480, %c0_6] : memref<608x128xbf16, #tpu.memory_space<vmem>>, vector<128x128xbf16>
    %c0_7 = arith.constant 0 : index
    %c0_8 = arith.constant 0 : index
    %7 = vector.load %arg3[%c0_7, %c0_8] : memref<8x128xf32, #tpu.memory_space<vmem>>, vector<1x128xf32>
    %c1 = arith.constant 1 : index
    %c0_9 = arith.constant 0 : index
    %8 = vector.load %arg3[%c1, %c0_9] : memref<8x128xf32, #tpu.memory_space<vmem>>, vector<1x128xf32>
    %c2 = arith.constant 2 : index
    %c0_10 = arith.constant 0 : index
    %9 = vector.load %arg3[%c2, %c0_10] : memref<8x128xf32, #tpu.memory_space<vmem>>, vector<1x128xf32>
    %c3 = arith.constant 3 : index
    %c0_11 = arith.constant 0 : index
    %10 = vector.load %arg3[%c3, %c0_11] : memref<8x128xf32, #tpu.memory_space<vmem>>, vector<1x128xf32>
    %c4 = arith.constant 4 : index
    %c0_12 = arith.constant 0 : index
    %11 = vector.load %arg3[%c4, %c0_12] : memref<8x128xf32, #tpu.memory_space<vmem>>, vector<1x128xf32>
    %c0_13 = arith.constant 0 : index
    %c0_14 = arith.constant 0 : index
    %12 = vector.load %arg0[%c0_13, %c0_14] : memref<64x32xbf16, #tpu.memory_space<vmem>>, vector<64x32xbf16>
    %cst = arith.constant dense<0.000000e+00> : vector<64x128xf32>
    %13 = tpu.matmul %12, %0, %cst {dimension_numbers = #tpu.dot_dimension_numbers<[1], [0], [0], [1], [0, 0, 1, 1], [], []>} : vector<64x32xbf16>, vector<32x128xbf16>, vector<64x128xf32> -> vector<64x128xf32>
    %14 = vector.broadcast %7 : vector<1x128xf32> to vector<64x128xf32>
    %15 = arith.addf %13, %14 : vector<64x128xf32>
    %c0_15 = arith.constant 0 : index
    %c0_16 = arith.constant 0 : index
    %16 = vector.load %arg1[%c0_15, %c0_16] : memref<64x32xf32, #tpu.memory_space<vmem>>, vector<64x32xf32>
    %cst_17 = arith.constant 0.000000e+00 : f32
    %17 = vector.broadcast %cst_17 : f32 to vector<8x32xf32>
    %cst_18 = arith.constant 0.000000e+00 : f32
    %18 = vector.broadcast %cst_18 : f32 to vector<8x32xf32>
    %19 = vector.extract_strided_slice %15 {offsets = [0, 0], sizes = [8, 128], strides = [1, 1]} : vector<64x128xf32> to vector<8x128xf32>
    %20 = arith.truncf %17 : vector<8x32xf32> to vector<8x32xbf16>
    %cst_19 = arith.constant dense<0.000000e+00> : vector<8x128xf32>
    %21 = tpu.matmul %20, %1, %cst_19 {dimension_numbers = #tpu.dot_dimension_numbers<[1], [0], [0], [1], [0, 0, 1, 1], [], []>} : vector<8x32xbf16>, vector<32x128xbf16>, vector<8x128xf32> -> vector<8x128xf32>
    %22 = arith.addf %19, %21 : vector<8x128xf32>
    %23 = arith.negf %22 : vector<8x128xf32>
    %24 = math.exp %23 : vector<8x128xf32>
    %cst_20 = arith.constant 1.000000e+00 : f32
    %25 = vector.broadcast %cst_20 : f32 to vector<8x128xf32>
    %26 = arith.addf %25, %24 : vector<8x128xf32>
    %27 = arith.divf %25, %26 : vector<8x128xf32>
    %28 = vector.extract_strided_slice %22 {offsets = [0, 96], sizes = [8, 32], strides = [1, 1]} : vector<8x128xf32> to vector<8x32xf32>
    %29 = math.tanh %28 : vector<8x32xf32>
    %30 = vector.extract_strided_slice %27 {offsets = [0, 0], sizes = [8, 32], strides = [1, 1]} : vector<8x128xf32> to vector<8x32xf32>
    %31 = vector.extract_strided_slice %27 {offsets = [0, 32], sizes = [8, 32], strides = [1, 1]} : vector<8x128xf32> to vector<8x32xf32>
    %32 = vector.extract_strided_slice %27 {offsets = [0, 64], sizes = [8, 32], strides = [1, 1]} : vector<8x128xf32> to vector<8x32xf32>
    %33 = arith.mulf %31, %18 : vector<8x32xf32>
    %34 = arith.mulf %30, %29 : vector<8x32xf32>
    %35 = arith.addf %33, %34 : vector<8x32xf32>
    %36 = math.tanh %35 : vector<8x32xf32>
    %37 = arith.mulf %32, %36 : vector<8x32xf32>
    %38 = vector.extract_strided_slice %16 {offsets = [0, 0], sizes = [8, 32], strides = [1, 1]} : vector<64x32xf32> to vector<8x32xf32>
    %39 = arith.subf %37, %17 : vector<8x32xf32>
    %40 = arith.mulf %38, %39 : vector<8x32xf32>
    %41 = arith.addf %17, %40 : vector<8x32xf32>
    %42 = arith.subf %35, %18 : vector<8x32xf32>
    %43 = arith.mulf %38, %42 : vector<8x32xf32>
    %44 = arith.addf %18, %43 : vector<8x32xf32>
    %45 = vector.extract_strided_slice %15 {offsets = [8, 0], sizes = [8, 128], strides = [1, 1]} : vector<64x128xf32> to vector<8x128xf32>
    %46 = arith.truncf %41 : vector<8x32xf32> to vector<8x32xbf16>
    %cst_21 = arith.constant dense<0.000000e+00> : vector<8x128xf32>
    %47 = tpu.matmul %46, %1, %cst_21 {dimension_numbers = #tpu.dot_dimension_numbers<[1], [0], [0], [1], [0, 0, 1, 1], [], []>} : vector<8x32xbf16>, vector<32x128xbf16>, vector<8x128xf32> -> vector<8x128xf32>
    %48 = arith.addf %45, %47 : vector<8x128xf32>
    %49 = arith.negf %48 : vector<8x128xf32>
    %50 = math.exp %49 : vector<8x128xf32>
    %cst_22 = arith.constant 1.000000e+00 : f32
    %51 = vector.broadcast %cst_22 : f32 to vector<8x128xf32>
    %52 = arith.addf %51, %50 : vector<8x128xf32>
    %53 = arith.divf %51, %52 : vector<8x128xf32>
    %54 = vector.extract_strided_slice %48 {offsets = [0, 96], sizes = [8, 32], strides = [1, 1]} : vector<8x128xf32> to vector<8x32xf32>
    %55 = math.tanh %54 : vector<8x32xf32>
    %56 = vector.extract_strided_slice %53 {offsets = [0, 0], sizes = [8, 32], strides = [1, 1]} : vector<8x128xf32> to vector<8x32xf32>
    %57 = vector.extract_strided_slice %53 {offsets = [0, 32], sizes = [8, 32], strides = [1, 1]} : vector<8x128xf32> to vector<8x32xf32>
    %58 = vector.extract_strided_slice %53 {offsets = [0, 64], sizes = [8, 32], strides = [1, 1]} : vector<8x128xf32> to vector<8x32xf32>
    %59 = arith.mulf %57, %44 : vector<8x32xf32>
    %60 = arith.mulf %56, %55 : vector<8x32xf32>
    %61 = arith.addf %59, %60 : vector<8x32xf32>
    %62 = math.tanh %61 : vector<8x32xf32>
    %63 = arith.mulf %58, %62 : vector<8x32xf32>
    %64 = vector.extract_strided_slice %16 {offsets = [8, 0], sizes = [8, 32], strides = [1, 1]} : vector<64x32xf32> to vector<8x32xf32>
    %65 = arith.subf %63, %41 : vector<8x32xf32>
    %66 = arith.mulf %64, %65 : vector<8x32xf32>
    %67 = arith.addf %41, %66 : vector<8x32xf32>
    %68 = arith.subf %61, %44 : vector<8x32xf32>
    %69 = arith.mulf %64, %68 : vector<8x32xf32>
    %70 = arith.addf %44, %69 : vector<8x32xf32>
    %71 = vector.extract_strided_slice %15 {offsets = [16, 0], sizes = [8, 128], strides = [1, 1]} : vector<64x128xf32> to vector<8x128xf32>
    %72 = arith.truncf %67 : vector<8x32xf32> to vector<8x32xbf16>
    %cst_23 = arith.constant dense<0.000000e+00> : vector<8x128xf32>
    %73 = tpu.matmul %72, %1, %cst_23 {dimension_numbers = #tpu.dot_dimension_numbers<[1], [0], [0], [1], [0, 0, 1, 1], [], []>} : vector<8x32xbf16>, vector<32x128xbf16>, vector<8x128xf32> -> vector<8x128xf32>
    %74 = arith.addf %71, %73 : vector<8x128xf32>
    %75 = arith.negf %74 : vector<8x128xf32>
    %76 = math.exp %75 : vector<8x128xf32>
    %cst_24 = arith.constant 1.000000e+00 : f32
    %77 = vector.broadcast %cst_24 : f32 to vector<8x128xf32>
    %78 = arith.addf %77, %76 : vector<8x128xf32>
    %79 = arith.divf %77, %78 : vector<8x128xf32>
    %80 = vector.extract_strided_slice %74 {offsets = [0, 96], sizes = [8, 32], strides = [1, 1]} : vector<8x128xf32> to vector<8x32xf32>
    %81 = math.tanh %80 : vector<8x32xf32>
    %82 = vector.extract_strided_slice %79 {offsets = [0, 0], sizes = [8, 32], strides = [1, 1]} : vector<8x128xf32> to vector<8x32xf32>
    %83 = vector.extract_strided_slice %79 {offsets = [0, 32], sizes = [8, 32], strides = [1, 1]} : vector<8x128xf32> to vector<8x32xf32>
    %84 = vector.extract_strided_slice %79 {offsets = [0, 64], sizes = [8, 32], strides = [1, 1]} : vector<8x128xf32> to vector<8x32xf32>
    %85 = arith.mulf %83, %70 : vector<8x32xf32>
    %86 = arith.mulf %82, %81 : vector<8x32xf32>
    %87 = arith.addf %85, %86 : vector<8x32xf32>
    %88 = math.tanh %87 : vector<8x32xf32>
    %89 = arith.mulf %84, %88 : vector<8x32xf32>
    %90 = vector.extract_strided_slice %16 {offsets = [16, 0], sizes = [8, 32], strides = [1, 1]} : vector<64x32xf32> to vector<8x32xf32>
    %91 = arith.subf %89, %67 : vector<8x32xf32>
    %92 = arith.mulf %90, %91 : vector<8x32xf32>
    %93 = arith.addf %67, %92 : vector<8x32xf32>
    %94 = arith.subf %87, %70 : vector<8x32xf32>
    %95 = arith.mulf %90, %94 : vector<8x32xf32>
    %96 = arith.addf %70, %95 : vector<8x32xf32>
    %97 = vector.extract_strided_slice %15 {offsets = [24, 0], sizes = [8, 128], strides = [1, 1]} : vector<64x128xf32> to vector<8x128xf32>
    %98 = arith.truncf %93 : vector<8x32xf32> to vector<8x32xbf16>
    %cst_25 = arith.constant dense<0.000000e+00> : vector<8x128xf32>
    %99 = tpu.matmul %98, %1, %cst_25 {dimension_numbers = #tpu.dot_dimension_numbers<[1], [0], [0], [1], [0, 0, 1, 1], [], []>} : vector<8x32xbf16>, vector<32x128xbf16>, vector<8x128xf32> -> vector<8x128xf32>
    %100 = arith.addf %97, %99 : vector<8x128xf32>
    %101 = arith.negf %100 : vector<8x128xf32>
    %102 = math.exp %101 : vector<8x128xf32>
    %cst_26 = arith.constant 1.000000e+00 : f32
    %103 = vector.broadcast %cst_26 : f32 to vector<8x128xf32>
    %104 = arith.addf %103, %102 : vector<8x128xf32>
    %105 = arith.divf %103, %104 : vector<8x128xf32>
    %106 = vector.extract_strided_slice %100 {offsets = [0, 96], sizes = [8, 32], strides = [1, 1]} : vector<8x128xf32> to vector<8x32xf32>
    %107 = math.tanh %106 : vector<8x32xf32>
    %108 = vector.extract_strided_slice %105 {offsets = [0, 0], sizes = [8, 32], strides = [1, 1]} : vector<8x128xf32> to vector<8x32xf32>
    %109 = vector.extract_strided_slice %105 {offsets = [0, 32], sizes = [8, 32], strides = [1, 1]} : vector<8x128xf32> to vector<8x32xf32>
    %110 = vector.extract_strided_slice %105 {offsets = [0, 64], sizes = [8, 32], strides = [1, 1]} : vector<8x128xf32> to vector<8x32xf32>
    %111 = arith.mulf %109, %96 : vector<8x32xf32>
    %112 = arith.mulf %108, %107 : vector<8x32xf32>
    %113 = arith.addf %111, %112 : vector<8x32xf32>
    %114 = math.tanh %113 : vector<8x32xf32>
    %115 = arith.mulf %110, %114 : vector<8x32xf32>
    %116 = vector.extract_strided_slice %16 {offsets = [24, 0], sizes = [8, 32], strides = [1, 1]} : vector<64x32xf32> to vector<8x32xf32>
    %117 = arith.subf %115, %93 : vector<8x32xf32>
    %118 = arith.mulf %116, %117 : vector<8x32xf32>
    %119 = arith.addf %93, %118 : vector<8x32xf32>
    %120 = arith.subf %113, %96 : vector<8x32xf32>
    %121 = arith.mulf %116, %120 : vector<8x32xf32>
    %122 = arith.addf %96, %121 : vector<8x32xf32>
    %123 = vector.extract_strided_slice %15 {offsets = [32, 0], sizes = [8, 128], strides = [1, 1]} : vector<64x128xf32> to vector<8x128xf32>
    %124 = arith.truncf %119 : vector<8x32xf32> to vector<8x32xbf16>
    %cst_27 = arith.constant dense<0.000000e+00> : vector<8x128xf32>
    %125 = tpu.matmul %124, %1, %cst_27 {dimension_numbers = #tpu.dot_dimension_numbers<[1], [0], [0], [1], [0, 0, 1, 1], [], []>} : vector<8x32xbf16>, vector<32x128xbf16>, vector<8x128xf32> -> vector<8x128xf32>
    %126 = arith.addf %123, %125 : vector<8x128xf32>
    %127 = arith.negf %126 : vector<8x128xf32>
    %128 = math.exp %127 : vector<8x128xf32>
    %cst_28 = arith.constant 1.000000e+00 : f32
    %129 = vector.broadcast %cst_28 : f32 to vector<8x128xf32>
    %130 = arith.addf %129, %128 : vector<8x128xf32>
    %131 = arith.divf %129, %130 : vector<8x128xf32>
    %132 = vector.extract_strided_slice %126 {offsets = [0, 96], sizes = [8, 32], strides = [1, 1]} : vector<8x128xf32> to vector<8x32xf32>
    %133 = math.tanh %132 : vector<8x32xf32>
    %134 = vector.extract_strided_slice %131 {offsets = [0, 0], sizes = [8, 32], strides = [1, 1]} : vector<8x128xf32> to vector<8x32xf32>
    %135 = vector.extract_strided_slice %131 {offsets = [0, 32], sizes = [8, 32], strides = [1, 1]} : vector<8x128xf32> to vector<8x32xf32>
    %136 = vector.extract_strided_slice %131 {offsets = [0, 64], sizes = [8, 32], strides = [1, 1]} : vector<8x128xf32> to vector<8x32xf32>
    %137 = arith.mulf %135, %122 : vector<8x32xf32>
    %138 = arith.mulf %134, %133 : vector<8x32xf32>
    %139 = arith.addf %137, %138 : vector<8x32xf32>
    %140 = math.tanh %139 : vector<8x32xf32>
    %141 = arith.mulf %136, %140 : vector<8x32xf32>
    %142 = vector.extract_strided_slice %16 {offsets = [32, 0], sizes = [8, 32], strides = [1, 1]} : vector<64x32xf32> to vector<8x32xf32>
    %143 = arith.subf %141, %119 : vector<8x32xf32>
    %144 = arith.mulf %142, %143 : vector<8x32xf32>
    %145 = arith.addf %119, %144 : vector<8x32xf32>
    %146 = arith.subf %139, %122 : vector<8x32xf32>
    %147 = arith.mulf %142, %146 : vector<8x32xf32>
    %148 = arith.addf %122, %147 : vector<8x32xf32>
    %149 = vector.extract_strided_slice %15 {offsets = [40, 0], sizes = [8, 128], strides = [1, 1]} : vector<64x128xf32> to vector<8x128xf32>
    %150 = arith.truncf %145 : vector<8x32xf32> to vector<8x32xbf16>
    %cst_29 = arith.constant dense<0.000000e+00> : vector<8x128xf32>
    %151 = tpu.matmul %150, %1, %cst_29 {dimension_numbers = #tpu.dot_dimension_numbers<[1], [0], [0], [1], [0, 0, 1, 1], [], []>} : vector<8x32xbf16>, vector<32x128xbf16>, vector<8x128xf32> -> vector<8x128xf32>
    %152 = arith.addf %149, %151 : vector<8x128xf32>
    %153 = arith.negf %152 : vector<8x128xf32>
    %154 = math.exp %153 : vector<8x128xf32>
    %cst_30 = arith.constant 1.000000e+00 : f32
    %155 = vector.broadcast %cst_30 : f32 to vector<8x128xf32>
    %156 = arith.addf %155, %154 : vector<8x128xf32>
    %157 = arith.divf %155, %156 : vector<8x128xf32>
    %158 = vector.extract_strided_slice %152 {offsets = [0, 96], sizes = [8, 32], strides = [1, 1]} : vector<8x128xf32> to vector<8x32xf32>
    %159 = math.tanh %158 : vector<8x32xf32>
    %160 = vector.extract_strided_slice %157 {offsets = [0, 0], sizes = [8, 32], strides = [1, 1]} : vector<8x128xf32> to vector<8x32xf32>
    %161 = vector.extract_strided_slice %157 {offsets = [0, 32], sizes = [8, 32], strides = [1, 1]} : vector<8x128xf32> to vector<8x32xf32>
    %162 = vector.extract_strided_slice %157 {offsets = [0, 64], sizes = [8, 32], strides = [1, 1]} : vector<8x128xf32> to vector<8x32xf32>
    %163 = arith.mulf %161, %148 : vector<8x32xf32>
    %164 = arith.mulf %160, %159 : vector<8x32xf32>
    %165 = arith.addf %163, %164 : vector<8x32xf32>
    %166 = math.tanh %165 : vector<8x32xf32>
    %167 = arith.mulf %162, %166 : vector<8x32xf32>
    %168 = vector.extract_strided_slice %16 {offsets = [40, 0], sizes = [8, 32], strides = [1, 1]} : vector<64x32xf32> to vector<8x32xf32>
    %169 = arith.subf %167, %145 : vector<8x32xf32>
    %170 = arith.mulf %168, %169 : vector<8x32xf32>
    %171 = arith.addf %145, %170 : vector<8x32xf32>
    %172 = arith.subf %165, %148 : vector<8x32xf32>
    %173 = arith.mulf %168, %172 : vector<8x32xf32>
    %174 = arith.addf %148, %173 : vector<8x32xf32>
    %175 = vector.extract_strided_slice %15 {offsets = [48, 0], sizes = [8, 128], strides = [1, 1]} : vector<64x128xf32> to vector<8x128xf32>
    %176 = arith.truncf %171 : vector<8x32xf32> to vector<8x32xbf16>
    %cst_31 = arith.constant dense<0.000000e+00> : vector<8x128xf32>
    %177 = tpu.matmul %176, %1, %cst_31 {dimension_numbers = #tpu.dot_dimension_numbers<[1], [0], [0], [1], [0, 0, 1, 1], [], []>} : vector<8x32xbf16>, vector<32x128xbf16>, vector<8x128xf32> -> vector<8x128xf32>
    %178 = arith.addf %175, %177 : vector<8x128xf32>
    %179 = arith.negf %178 : vector<8x128xf32>
    %180 = math.exp %179 : vector<8x128xf32>
    %cst_32 = arith.constant 1.000000e+00 : f32
    %181 = vector.broadcast %cst_32 : f32 to vector<8x128xf32>
    %182 = arith.addf %181, %180 : vector<8x128xf32>
    %183 = arith.divf %181, %182 : vector<8x128xf32>
    %184 = vector.extract_strided_slice %178 {offsets = [0, 96], sizes = [8, 32], strides = [1, 1]} : vector<8x128xf32> to vector<8x32xf32>
    %185 = math.tanh %184 : vector<8x32xf32>
    %186 = vector.extract_strided_slice %183 {offsets = [0, 0], sizes = [8, 32], strides = [1, 1]} : vector<8x128xf32> to vector<8x32xf32>
    %187 = vector.extract_strided_slice %183 {offsets = [0, 32], sizes = [8, 32], strides = [1, 1]} : vector<8x128xf32> to vector<8x32xf32>
    %188 = vector.extract_strided_slice %183 {offsets = [0, 64], sizes = [8, 32], strides = [1, 1]} : vector<8x128xf32> to vector<8x32xf32>
    %189 = arith.mulf %187, %174 : vector<8x32xf32>
    %190 = arith.mulf %186, %185 : vector<8x32xf32>
    %191 = arith.addf %189, %190 : vector<8x32xf32>
    %192 = math.tanh %191 : vector<8x32xf32>
    %193 = arith.mulf %188, %192 : vector<8x32xf32>
    %194 = vector.extract_strided_slice %16 {offsets = [48, 0], sizes = [8, 32], strides = [1, 1]} : vector<64x32xf32> to vector<8x32xf32>
    %195 = arith.subf %193, %171 : vector<8x32xf32>
    %196 = arith.mulf %194, %195 : vector<8x32xf32>
    %197 = arith.addf %171, %196 : vector<8x32xf32>
    %198 = arith.subf %191, %174 : vector<8x32xf32>
    %199 = arith.mulf %194, %198 : vector<8x32xf32>
    %200 = arith.addf %174, %199 : vector<8x32xf32>
    %201 = vector.extract_strided_slice %15 {offsets = [56, 0], sizes = [8, 128], strides = [1, 1]} : vector<64x128xf32> to vector<8x128xf32>
    %202 = arith.truncf %197 : vector<8x32xf32> to vector<8x32xbf16>
    %cst_33 = arith.constant dense<0.000000e+00> : vector<8x128xf32>
    %203 = tpu.matmul %202, %1, %cst_33 {dimension_numbers = #tpu.dot_dimension_numbers<[1], [0], [0], [1], [0, 0, 1, 1], [], []>} : vector<8x32xbf16>, vector<32x128xbf16>, vector<8x128xf32> -> vector<8x128xf32>
    %204 = arith.addf %201, %203 : vector<8x128xf32>
    %205 = arith.negf %204 : vector<8x128xf32>
    %206 = math.exp %205 : vector<8x128xf32>
    %cst_34 = arith.constant 1.000000e+00 : f32
    %207 = vector.broadcast %cst_34 : f32 to vector<8x128xf32>
    %208 = arith.addf %207, %206 : vector<8x128xf32>
    %209 = arith.divf %207, %208 : vector<8x128xf32>
    %210 = vector.extract_strided_slice %204 {offsets = [0, 96], sizes = [8, 32], strides = [1, 1]} : vector<8x128xf32> to vector<8x32xf32>
    %211 = math.tanh %210 : vector<8x32xf32>
    %212 = vector.extract_strided_slice %209 {offsets = [0, 0], sizes = [8, 32], strides = [1, 1]} : vector<8x128xf32> to vector<8x32xf32>
    %213 = vector.extract_strided_slice %209 {offsets = [0, 32], sizes = [8, 32], strides = [1, 1]} : vector<8x128xf32> to vector<8x32xf32>
    %214 = vector.extract_strided_slice %209 {offsets = [0, 64], sizes = [8, 32], strides = [1, 1]} : vector<8x128xf32> to vector<8x32xf32>
    %215 = arith.mulf %213, %200 : vector<8x32xf32>
    %216 = arith.mulf %212, %211 : vector<8x32xf32>
    %217 = arith.addf %215, %216 : vector<8x32xf32>
    %218 = math.tanh %217 : vector<8x32xf32>
    %219 = arith.mulf %214, %218 : vector<8x32xf32>
    %220 = vector.extract_strided_slice %16 {offsets = [56, 0], sizes = [8, 32], strides = [1, 1]} : vector<64x32xf32> to vector<8x32xf32>
    %221 = arith.subf %219, %197 : vector<8x32xf32>
    %222 = arith.mulf %220, %221 : vector<8x32xf32>
    %223 = arith.addf %197, %222 : vector<8x32xf32>
    %224 = arith.truncf %223 : vector<8x32xf32> to vector<8x32xbf16>
    %cst_35 = arith.constant dense<0.000000e+00> : vector<8x128xf32>
    %225 = tpu.matmul %224, %2, %cst_35 {dimension_numbers = #tpu.dot_dimension_numbers<[1], [0], [0], [1], [0, 0, 1, 1], [], []>} : vector<8x32xbf16>, vector<32x128xbf16>, vector<8x128xf32> -> vector<8x128xf32>
    %226 = vector.broadcast %8 : vector<1x128xf32> to vector<8x128xf32>
    %227 = arith.addf %225, %226 : vector<8x128xf32>
    %cst_36 = arith.constant 0.000000e+00 : f32
    %228 = vector.broadcast %cst_36 : f32 to vector<8x128xf32>
    %229 = arith.cmpf oge, %227, %228 : vector<8x128xf32>
    %cst_37 = arith.constant 1.000000e-01 : f32
    %230 = vector.broadcast %cst_37 : f32 to vector<8x128xf32>
    %231 = arith.mulf %230, %227 : vector<8x128xf32>
    %232 = arith.select %229, %227, %231 : vector<8x128xi1>, vector<8x128xf32>
    %c0_38 = arith.constant 0 : index
    %c0_39 = arith.constant 0 : index
    %233 = vector.load %arg4[%c0_38, %c0_39] : memref<8x128xf32, #tpu.memory_space<vmem>>, vector<8x128xf32>
    %234 = arith.addf %232, %233 : vector<8x128xf32>
    %235 = arith.truncf %234 : vector<8x128xf32> to vector<8x128xbf16>
    %cst_40 = arith.constant dense<0.000000e+00> : vector<8x128xf32>
    %236 = tpu.matmul %235, %3, %cst_40 {dimension_numbers = #tpu.dot_dimension_numbers<[1], [0], [0], [1], [0, 0, 1, 1], [], []>} : vector<8x128xbf16>, vector<128x128xbf16>, vector<8x128xf32> -> vector<8x128xf32>
    %cst_41 = arith.constant dense<0.000000e+00> : vector<8x128xf32>
    %237 = tpu.matmul %235, %4, %cst_41 {dimension_numbers = #tpu.dot_dimension_numbers<[1], [0], [0], [1], [0, 0, 1, 1], [], []>} : vector<8x128xbf16>, vector<128x128xbf16>, vector<8x128xf32> -> vector<8x128xf32>
    %238 = tpu.concatenate %236, %237 in 0 : vector<8x128xf32>, vector<8x128xf32> -> vector<16x128xf32>
    %239 = arith.truncf %238 : vector<16x128xf32> to vector<16x128xbf16>
    %240 = tpu.iota {dimensions = array<i32: 1>} : vector<8x16xi32>
    %c0_42 = arith.constant 0 : index
    %c0_43 = arith.constant 0 : index
    %241 = vector.load %arg5[%c0_42, %c0_43] : memref<8x1xi32, #tpu.memory_space<vmem>>, vector<8x1xi32>
    %242 = vector.broadcast %241 : vector<8x1xi32> to vector<8x16xi32>
    %243 = arith.cmpi eq, %240, %242 : vector<8x16xi32>
    %c0_44 = arith.constant 0 : index
    %c0_45 = arith.constant 0 : index
    %244 = vector.load %arg6[%c0_44, %c0_45] : memref<8x1xi32, #tpu.memory_space<vmem>>, vector<8x1xi32>
    %c8_i32 = arith.constant 8 : i32
    %245 = vector.broadcast %c8_i32 : i32 to vector<8x1xi32>
    %246 = arith.addi %244, %245 : vector<8x1xi32>
    %247 = vector.broadcast %246 : vector<8x1xi32> to vector<8x16xi32>
    %248 = arith.cmpi eq, %240, %247 : vector<8x16xi32>
    %249 = arith.ori %243, %248 : vector<8x16xi1>
    %250 = arith.extui %249 : vector<8x16xi1> to vector<8x16xi32>
    %251 = arith.sitofp %250 : vector<8x16xi32> to vector<8x16xf32>
    %252 = arith.truncf %251 : vector<8x16xf32> to vector<8x16xbf16>
    %cst_46 = arith.constant dense<0.000000e+00> : vector<8x128xf32>
    %253 = tpu.matmul %252, %239, %cst_46 {dimension_numbers = #tpu.dot_dimension_numbers<[1], [0], [0], [1], [0, 0, 1, 1], [], []>} : vector<8x16xbf16>, vector<16x128xbf16>, vector<8x128xf32> -> vector<8x128xf32>
    %254 = vector.broadcast %9 : vector<1x128xf32> to vector<8x128xf32>
    %255 = arith.addf %253, %254 : vector<8x128xf32>
    %cst_47 = arith.constant 0.000000e+00 : f32
    %256 = vector.broadcast %cst_47 : f32 to vector<8x128xf32>
    %257 = arith.cmpf oge, %255, %256 : vector<8x128xf32>
    %cst_48 = arith.constant 1.000000e-01 : f32
    %258 = vector.broadcast %cst_48 : f32 to vector<8x128xf32>
    %259 = arith.mulf %258, %255 : vector<8x128xf32>
    %260 = arith.select %257, %255, %259 : vector<8x128xi1>, vector<8x128xf32>
    %261 = arith.truncf %260 : vector<8x128xf32> to vector<8x128xbf16>
    %cst_49 = arith.constant dense<0.000000e+00> : vector<8x128xf32>
    %262 = tpu.matmul %261, %5, %cst_49 {dimension_numbers = #tpu.dot_dimension_numbers<[1], [0], [0], [1], [0, 0, 1, 1], [], []>} : vector<8x128xbf16>, vector<128x128xbf16>, vector<8x128xf32> -> vector<8x128xf32>
    %263 = vector.broadcast %10 : vector<1x128xf32> to vector<8x128xf32>
    %264 = arith.addf %262, %263 : vector<8x128xf32>
    %cst_50 = arith.constant 0.000000e+00 : f32
    %265 = vector.broadcast %cst_50 : f32 to vector<8x128xf32>
    %266 = arith.cmpf oge, %264, %265 : vector<8x128xf32>
    %cst_51 = arith.constant 1.000000e-01 : f32
    %267 = vector.broadcast %cst_51 : f32 to vector<8x128xf32>
    %268 = arith.mulf %267, %264 : vector<8x128xf32>
    %269 = arith.select %266, %264, %268 : vector<8x128xi1>, vector<8x128xf32>
    %270 = arith.truncf %269 : vector<8x128xf32> to vector<8x128xbf16>
    %cst_52 = arith.constant dense<0.000000e+00> : vector<8x128xf32>
    %271 = tpu.matmul %270, %6, %cst_52 {dimension_numbers = #tpu.dot_dimension_numbers<[1], [0], [0], [1], [0, 0, 1, 1], [], []>} : vector<8x128xbf16>, vector<128x128xbf16>, vector<8x128xf32> -> vector<8x128xf32>
    %272 = vector.broadcast %11 : vector<1x128xf32> to vector<8x128xf32>
    %273 = arith.addf %271, %272 : vector<8x128xf32>
    %c0_53 = arith.constant 0 : index
    %c0_54 = arith.constant 0 : index
    %274 = vector.load %arg7[%c0_53, %c0_54] : memref<8x128xf32, #tpu.memory_space<vmem>>, vector<8x128xf32>
    tpu.vector_store %arg7[%c0_53, %c0_54], %273 {strides = array<i32>} : memref<8x128xf32, #tpu.memory_space<vmem>>, vector<8x128xf32>,
    return
  }
}

</mosaic_0001>

<bundles_post_ra>
// kernel: reverse
= control target key start
LH: loop header
LB: loop body
LE: loop exit
PB: predicated region body
PF: predicated region fallthrough
CT: control target
= control target key end

     0   :  { %v2_v0 = vlaneseq  ;;  %s97_s0 = inlined_call_operand.vmem [shape: f32[8,8], index: 0, kind: input, shape index: {}]   ;;  %s98_s1 = inlined_call_operand.vmem [shape: f32[8,8], index: 1, kind: output, shape index: {}]  }
   0x1   :  { %v32_v2 = vld [vmem:[%s97_s0] sm:$0xff] }
   0x2   :  { %v3_v1 = vsub.s32 7, %v2_v0 }
   0x4   :  { %4 = vset.pattern.permute.xlu0 %v3_v1 }
   0x5   :  { %38 = vperm.xlu0 %4, %v32_v2  }
  0x84   :  { %v39_v3 = vpop.permute.xlu0 %38 }
  0x85   :  { %69 = vst [vmem:[%s98_s1] sm:$0xff] %v39_v3 }

// kernel: forward.1
= control target key start
LH: loop header
LB: loop body
LE: loop exit
PB: predicated region body
PF: predicated region fallthrough
CT: control target
= control target key end

     0   :  { %v1889_v1 = vmov 0.0   ;;  %vm1890_vm0 = vmmov 0   ;;  %v1891_v3 = vmov 0   ;;  %vm152_vm1 = vcmask 261120   ;;  %s1892_s15 = smov 32   ;;  %s1893_s16 = smov 96   ;;  %s2305_s2 = inlined_call_operand.vmem [shape: bf16[608,128], index: 2, kind: input, shape index: {}]   ;;  %s2306_s0 = inlined_call_operand.vmem [shape: bf16[64,32], index: 0, kind: input, shape index: {}]   ;;  %s2307_s3 = inlined_call_operand.vmem [shape: f32[8,128], index: 3, kind: input, shape index: {}]   ;;  %s2308_s1 = inlined_call_operand.vmem [shape: f32[64,32], index: 1, kind: input, shape index: {}]   ;;  %s2309_s5 = inlined_call_operand.vmem [shape: s32[8,1], index: 5, kind: input, shape index: {}]   ;;  %s2310_s6 = inlined_call_operand.vmem [shape: s32[8,1], index: 6, kind: input, shape index: {}]   ;;  %s2311_s4 = inlined_call_operand.vmem [shape: f32[8,128], index: 4, kind: input, shape index: {}]   ;;  %s2312_s7 = inlined_call_operand.vmem [shape: f32[8,128], index: 7, kind: output, shape index: {}]  }
   0x1   :  { %v1783_v0 = vld [vmem:[%s2305_s2] sm:$0xff]   ;;  %1617 = vmatprep.subr.bf16.mxu1 %v1889_v1  ;;  %1621 = vmatprep.mubr.msk.bf16.mxu1 %vm1890_vm0, %v1889_v1  ;;  %v1944_v2 = vld [vmem:[%s2305_s2 + $0x10] sm:$0xff]   ;;  %v1785_v4 = vld [vmem:[%s2305_s2 + $0x8] sm:$0xff]   ;;  %s1894_s19 = smov 64   ;;  %vm1224_vm6 = vcmask 130048  }
   0x2   :  { %1782 = vset.pattern.permute.xlu0 %v1891_v3  ;;  %1781 = vset.pattern.permute.xlu1 %v1891_v3  ;;  %v1953_v5 = vld [vmem:[%s2305_s2 + $0x18] sm:$0xff]   ;;  %v1787_v6 = vld [vmem:[%s2306_s0] sm:$0xff]   ;;  %v1788_v7 = vld [vmem:[%s2306_s0 + $0x8] sm:$0xff]  }
   0x3   :  { %1605 = vmatprep.subr.bf16.mxu0 %v1783_v0  ;;  %1618 = vmatpush3.bf16.msra.mxu1 %v1944_v2  ;;  %v1980_v8 = vld [vmem:[%s2307_s3] ss:$0 sm:$0xff]  ;;  %v1789_v57 = vld [vmem:[%s2306_s0 + $0x10] sm:$0xff]   ;;  %v1790_v58 = vld [vmem:[%s2306_s0 + $0x18] sm:$0xff]  }
   0x4   :  { %1606 = vmatpush3.bf16.msra.mxu0 %v1783_v0  ;;  %1619 = vmatprep.subr.bf16.mxu1 %v1889_v1  ;;  %v230_v30 = vld [vmem:[%s2308_s1] sm:$0xff]  ;;  %v231_v60 = vld [vmem:[%s2308_s1 + $0x8] sm:$0xff] }
   0x5   :  { %1607 = vmatprep.subr.bf16.mxu0 %v1785_v4  ;;  %1609 = vmatprep.mubr.msk.bf16.mxu0 %vm152_vm1, %v1787_v6 }
   0x7   :  { %1620 = vmatpush3.bf16.msra.mxu1 %v1953_v5 }
   0x8   :  { %1608 = vmatpush3.bf16.msra.mxu0 %v1785_v4  ;;  %1625 = vmatprep.subr.bf16.mxu1 %v1889_v1 }
   0x9   :  { %1633 = vmatprep.subr.bf16.mxu0 %v1889_v1 }
   0xa   :  { %1622 = vmatmul.mubr.bf16.vlgmr.msra.gmra.mrb[0].mxu1 %v1891_v3 }
   0xb   :  { %1610 = vmatmul.mubr.msk.bf16.vlgmr.msra.gmra.mrb[0].mxu0 %vm152_vm1, %v1788_v7  ;;  %1626 = vmatpush3.bf16.msra.mxu1 %v1944_v2 }
   0xc   :  { %1629 = vmatprep.mubr.msk.bf16.mxu1 %vm1890_vm0, %v1889_v1  ;;  %1627 = vmatprep.subr.bf16.mxu1 %v1889_v1 }
   0xd   :  { %1634 = vmatpush3.bf16.msra.mxu0 %v1944_v2  ;;  %1613 = vmatprep.mubr.msk.bf16.mxu0 %vm152_vm1, %v1789_v57 }
   0xe   :  { %1635 = vmatprep.subr.bf16.mxu0 %v1889_v1 }
   0xf   :  { %1628 = vmatpush3.bf16.msra.mxu1 %v1953_v5 }
  0x10   :  { %1641 = vmatprep.subr.bf16.mxu1 %v1889_v1 }
  0x11   :  { %1636 = vmatpush3.bf16.msra.mxu0 %v1953_v5 }
  0x12   :  { %1649 = vmatprep.subr.bf16.mxu0 %v1889_v1 }
  0x13   :  { %1614 = vmatmul.mubr.msk.bf16.gmra.mrb[4].mxu0 %vm152_vm1, %v1790_v58 }
  0x14   :  { %1637 = vmatprep.mubr.msk.bf16.mxu0 %vm1890_vm0, %v1889_v1 }
  0xdd   :  { %v287_v10 = vpop.f32.mrb[0].mxu1 }
  0xde   :  { %v1982_v9 = vpop.f32.mrb[0].mxu0  ;;  %v1623_v12 = vpop.f32.mrb[1].mxu1 }
  0xdf   :  { %v199_v11 = vpop.f32.mrb[1].mxu0  ;;  %v290_v15 = vpop.f32.mrb[2].mxu1 }
  0xe0   :  { %v200_v13 = vadd.f32 %v1980_v8, %v199_v11  ;;  %v1985_v14 = vpop.f32.mrb[2].mxu0  ;;  %v1624_v17 = vpop.f32.mrb[3].mxu1 }
  0xe1   :  { %v202_v16 = vpop.f32.mrb[3].mxu0  ;;  %v208_v17 = vadd.f32 %v1982_v9, %v1980_v8 }
  0xe2   :  { %v293_v18 = vadd.f32 %v287_v10, %v200_v13  ;;  %v203_v38 = vadd.f32 %v1980_v8, %v202_v16 }
  0xe4   :  { %1825 = vtanh.f32 %v293_v18  ;;  %v1478_v20 = vmul.f32 -1.442695, %v293_v18 }
  0xe6   :  { %1827 = vpow2.f32 %v1478_v20  ;;  %v2031_v12 = vpop.f32.mrb[4].mxu0 }
  0xe7   :  { %v2033_v13 = vpop.f32.mrb[5].mxu0 }
  0xe8   :  { %v2035_v15 = vpop.f32.mrb[6].mxu0 }
  0xe9   :  { %v2037_v16 = vpop.f32.mrb[7].mxu0 }
  0xee   :  { %v1826_v19 = vpop.eup %1825 }
  0xef   :  { %303 = vrot.lane.b32.xlu0 %v1826_v19, %s1892_s15 }
  0xf0   :  { %v1828_v21 = vpop.eup %1827 }
  0xf1   :  { %v297_v22 = vadd.f32 1.0, %v1828_v21 }
  0xf3   :  { %1829 = vrcp.f32 %v297_v22 }
  0xfd   :  { %v1830_v23 = vpop.eup %1829 }
  0xfe   :  { %v301_v26 = vmul.f32 0.0, %v1830_v23 }
 0x161   :  { %v304_v24 = vpop.permute.xlu0 %303 }
 0x162   :  { %v306_v25 = vmul.f32 %v1830_v23, %v304_v24 }
 0x164   :  { %308 = vrot.lane.b32.xlu0 %v306_v25, %s1892_s15 }
 0x1d6   :  { %v309_v27 = vpop.permute.xlu0 %308 }
 0x1d7   :  { %v311_v28 = vadd.f32 %v309_v27, %v301_v26 }
 0x1d9   :  { %1831 = vtanh.f32 %v311_v28  ;;  %325 = vrot.lane.b32.xlu0 %v311_v28, %s1893_s16 }
 0x1e3   :  { %v1832_v29 = vpop.eup %1831 }
 0x1e4   :  { %314 = vrot.lane.b32.xlu1 %v1832_v29, %s1892_s15 }
 0x24b   :  { %v326_v31 = vpop.permute.xlu0 %325 }
 0x24c   :  { %v328_v32 = vmul.f32 %v326_v31, %v230_v30 }
 0x24e   :  { %383 = vrot.lane.b32.xlu0 %v328_v32, %s1892_s15 }
 0x256   :  { %v315_v33 = vpop.permute.xlu1 %314 }
 0x257   :  { %v317_v34 = vmul.f32 %v1830_v23, %v315_v33 }
 0x259   :  { %319 = vrot.lane.b32.xlu1 %v317_v34, %s1894_s19 }
 0x2c0   :  { %v384_v51 = vpop.permute.xlu0 %383 }
 0x2cb   :  { %v320_v35 = vpop.permute.xlu1 %319 }
 0x2cc   :  { %v322_v36 = vmul.f32 %v320_v35, %v230_v30 }
 0x2ce   :  { %v330_v37 = vpack.c.bf16 %v322_v36, %v322_v36 }
 0x2d0   :  { %1630 = vmatmul.mubr.msk.bf16.vlgmr.msra.gmra.mrb[4].mxu1 %vm152_vm1, %v330_v37 }
 0x2d1   :  { %1642 = vmatpush3.bf16.msra.mxu1 %v1944_v2  ;;  %1645 = vmatprep.mubr.msk.bf16.mxu1 %vm1890_vm0, %v1889_v1 }
 0x2d2   :  { %1643 = vmatprep.subr.bf16.mxu1 %v1889_v1 }
 0x2d5   :  { %1644 = vmatpush3.bf16.msra.mxu1 %v1953_v5 }
 0x2d6   :  { %1657 = vmatprep.subr.bf16.mxu1 %v1889_v1 }
 0x3a3   :  { %v368_v39 = vpop.f32.mrb[4].mxu1 }
 0x3a4   :  { %v374_v40 = vadd.f32 %v368_v39, %v203_v38  ;;  %v1631_v41 = vpop.f32.mrb[5].mxu1 }
 0x3a5   :  { %v371_v42 = vpop.f32.mrb[6].mxu1 }
 0x3a6   :  { %1833 = vtanh.f32 %v374_v40  ;;  %v1632_v43 = vpop.f32.mrb[7].mxu1  ;;  %v1480_v45 = vmul.f32 -1.442695, %v374_v40 }
 0x3a8   :  { %1835 = vpow2.f32 %v1480_v45 }
 0x3b0   :  { %v1834_v44 = vpop.eup %1833 }
 0x3b1   :  { %388 = vrot.lane.b32.xlu1 %v1834_v44, %s1892_s15 }
 0x3b2   :  { %v1836_v46 = vpop.eup %1835 }
 0x3b3   :  { %v378_v47 = vadd.f32 1.0, %v1836_v46 }
 0x3b5   :  { %1837 = vrcp.f32 %v378_v47  ;;  %v211_v47 = vadd.f32 %v1985_v14, %v1980_v8 }
 0x3bf   :  { %v1838_v48 = vpop.eup %1837 }
 0x3c0   :  { %v386_v52 = vmul.f32 %v1838_v48, %v384_v51 }
 0x423   :  { %v389_v49 = vpop.permute.xlu1 %388 }
 0x424   :  { %v391_v50 = vmul.f32 %v1838_v48, %v389_v49 }
 0x426   :  { %393 = vrot.lane.b32.xlu1 %v391_v50, %s1892_s15 }
 0x42a   :  { %404 = vrot.lane.b32.xlu1 %v322_v36, %s1894_s19 }
 0x498   :  { %v394_v53 = vpop.permute.xlu1 %393 }
 0x499   :  { %v396_v54 = vadd.f32 %v394_v53, %v386_v52 }
 0x49b   :  { %1839 = vtanh.f32 %v396_v54  ;;  %v414_v55 = vsub.f32 %v396_v54, %v384_v51 }
 0x49c   :  { %v405_v59 = vpop.permute.xlu1 %404 }
 0x49d   :  { %416 = vrot.lane.b32.xlu1 %v414_v55, %s1893_s16 }
 0x4a5   :  { %v1840_v56 = vpop.eup %1839 }
 0x4a6   :  { %399 = vrot.lane.b32.xlu0 %v1840_v56, %s1892_s15 }
 0x50f   :  { %v417_v61 = vpop.permute.xlu1 %416 }
 0x510   :  { %v419_v62 = vmul.f32 %v417_v61, %v231_v60 }
 0x512   :  { %v420_v63 = vadd.f32 %v419_v62, %v328_v32 }
 0x514   :  { %474 = vrot.lane.b32.xlu1 %v420_v63, %s1892_s15 }
 0x518   :  { %v400_v0 = vpop.permute.xlu0 %399 }
 0x519   :  { %v402_v3 = vmul.f32 %v1838_v48, %v400_v0 }
 0x51b   :  { %v407_v4 = vsub.f32 %v402_v3, %v405_v59 }
 0x51d   :  { %409 = vrot.lane.b32.xlu0 %v407_v4, %s1894_s19  ;;  %v233_v4 = vld [vmem:[%s2308_s1 + $0x18] sm:$0xff] }
 0x586   :  { %v475_v9 = vpop.permute.xlu1 %474 }
 0x58f   :  { %v410_v6 = vpop.permute.xlu0 %409 }
 0x590   :  { %v412_v7 = vmul.f32 %v410_v6, %v231_v60 }
 0x592   :  { %v413_v10 = vadd.f32 %v412_v7, %v322_v36  ;;  %v232_v36 = vld [vmem:[%s2308_s1 + $0x10] sm:$0xff] }
 0x594   :  { %v421_v11 = vpack.c.bf16 %v413_v10, %v413_v10 }
 0x596   :  { %1638 = vmatmul.mubr.msk.bf16.vlgmr.msra.gmra.mrb[8].mxu0 %vm152_vm1, %v421_v11 }
 0x597   :  { %1650 = vmatpush3.bf16.msra.mxu0 %v1944_v2  ;;  %1653 = vmatprep.mubr.msk.bf16.mxu0 %vm1890_vm0, %v1889_v1 }
 0x598   :  { %1651 = vmatprep.subr.bf16.mxu0 %v1889_v1 }
 0x59b   :  { %1652 = vmatpush3.bf16.msra.mxu0 %v1953_v5 }
 0x59c   :  { %1665 = vmatprep.subr.bf16.mxu0 %v1889_v1 }
 0x669   :  { %v459_v18 = vpop.f32.mrb[8].mxu0 }
 0x66a   :  { %v465_v19 = vadd.f32 %v459_v18, %v208_v17  ;;  %v1639_v20 = vpop.f32.mrb[9].mxu0 }
 0x66b   :  { %v462_v21 = vpop.f32.mrb[10].mxu0 }
 0x66c   :  { %1841 = vtanh.f32 %v465_v19  ;;  %v1640_v22 = vpop.f32.mrb[11].mxu0  ;;  %v1482_v24 = vmul.f32 -1.442695, %v465_v19 }
 0x66e   :  { %1843 = vpow2.f32 %v1482_v24 }
 0x676   :  { %v1842_v23 = vpop.eup %1841 }
 0x677   :  { %479 = vrot.lane.b32.xlu0 %v1842_v23, %s1892_s15  ;;  %v216_v23 = vadd.f32 %v1980_v8, %v2033_v13 }
 0x678   :  { %v1844_v25 = vpop.eup %1843 }
 0x679   :  { %v469_v26 = vadd.f32 1.0, %v1844_v25 }
 0x67b   :  { %1845 = vrcp.f32 %v469_v26 }
 0x685   :  { %v1846_v27 = vpop.eup %1845 }
 0x686   :  { %v477_v30 = vmul.f32 %v1846_v27, %v475_v9 }
 0x6e9   :  { %v480_v28 = vpop.permute.xlu0 %479 }
 0x6ea   :  { %v482_v29 = vmul.f32 %v1846_v27, %v480_v28 }
 0x6ec   :  { %484 = vrot.lane.b32.xlu0 %v482_v29, %s1892_s15 }
 0x6f0   :  { %495 = vrot.lane.b32.xlu0 %v413_v10, %s1894_s19 }
 0x75e   :  { %v485_v31 = vpop.permute.xlu0 %484 }
 0x75f   :  { %v487_v32 = vadd.f32 %v485_v31, %v477_v30 }
 0x761   :  { %1847 = vtanh.f32 %v487_v32  ;;  %v505_v33 = vsub.f32 %v487_v32, %v475_v9 }
 0x762   :  { %v496_v35 = vpop.permute.xlu0 %495 }
 0x763   :  { %507 = vrot.lane.b32.xlu0 %v505_v33, %s1893_s16 }
 0x76b   :  { %v1848_v34 = vpop.eup %1847 }
 0x76c   :  { %490 = vrot.lane.b32.xlu1 %v1848_v34, %s1892_s15 }
 0x7d5   :  { %v508_v37 = vpop.permute.xlu0 %507 }
 0x7d6   :  { %v510_v38 = vmul.f32 %v508_v37, %v232_v36 }
 0x7d8   :  { %v511_v39 = vadd.f32 %v510_v38, %v420_v63 }
 0x7da   :  { %565 = vrot.lane.b32.xlu0 %v511_v39, %s1892_s15 }
 0x7de   :  { %v491_v40 = vpop.permute.xlu1 %490 }
 0x7df   :  { %v493_v41 = vmul.f32 %v1846_v27, %v491_v40 }
 0x7e1   :  { %v498_v42 = vsub.f32 %v493_v41, %v496_v35  ;;  %v234_v41 = vld [vmem:[%s2308_s1 + $0x20] sm:$0xff] }
 0x7e3   :  { %500 = vrot.lane.b32.xlu1 %v498_v42, %s1894_s19 }
 0x84c   :  { %v566_v14 = vpop.permute.xlu0 %565 }
 0x855   :  { %v501_v43 = vpop.permute.xlu1 %500 }
 0x856   :  { %v503_v44 = vmul.f32 %v501_v43, %v232_v36 }
 0x858   :  { %v504_v45 = vadd.f32 %v503_v44, %v413_v10 }
 0x85a   :  { %v512_v46 = vpack.c.bf16 %v504_v45, %v504_v45 }
 0x85c   :  { %1646 = vmatmul.mubr.msk.bf16.vlgmr.msra.gmra.mrb[8].mxu1 %vm152_vm1, %v512_v46 }
 0x85d   :  { %1658 = vmatpush3.bf16.msra.mxu1 %v1944_v2  ;;  %1661 = vmatprep.mubr.msk.bf16.mxu1 %vm1890_vm0, %v1889_v1 }
 0x85e   :  { %1659 = vmatprep.subr.bf16.mxu1 %v1889_v1 }
 0x861   :  { %1660 = vmatpush3.bf16.msra.mxu1 %v1953_v5 }
 0x862   :  { %1673 = vmatprep.subr.bf16.mxu1 %v1889_v1 }
 0x92f   :  { %v550_v48 = vpop.f32.mrb[8].mxu1 }
 0x930   :  { %v556_v49 = vadd.f32 %v550_v48, %v211_v47  ;;  %v1647_v50 = vpop.f32.mrb[9].mxu1 }
 0x931   :  { %v553_v51 = vpop.f32.mrb[10].mxu1 }
 0x932   :  { %1849 = vtanh.f32 %v556_v49  ;;  %v1648_v52 = vpop.f32.mrb[11].mxu1  ;;  %v1484_v54 = vmul.f32 -1.442695, %v556_v49 }
 0x933   :  { %v219_v52 = vadd.f32 %v1980_v8, %v2037_v16 }
 0x934   :  { %1851 = vpow2.f32 %v1484_v54 }
 0x93c   :  { %v1850_v53 = vpop.eup %1849 }
 0x93d   :  { %570 = vrot.lane.b32.xlu1 %v1850_v53, %s1892_s15 }
 0x93e   :  { %v1852_v55 = vpop.eup %1851 }
 0x93f   :  { %v560_v56 = vadd.f32 1.0, %v1852_v55 }
 0x941   :  { %1853 = vrcp.f32 %v560_v56 }
 0x94b   :  { %v1854_v57 = vpop.eup %1853 }
 0x94c   :  { %v568_v60 = vmul.f32 %v1854_v57, %v566_v14 }
 0x9af   :  { %v571_v58 = vpop.permute.xlu1 %570 }
 0x9b0   :  { %v573_v59 = vmul.f32 %v1854_v57, %v571_v58 }
 0x9b2   :  { %575 = vrot.lane.b32.xlu1 %v573_v59, %s1892_s15 }
 0x9b6   :  { %586 = vrot.lane.b32.xlu1 %v504_v45, %s1894_s19 }
 0xa24   :  { %v576_v61 = vpop.permute.xlu1 %575 }
 0xa25   :  { %v578_v62 = vadd.f32 %v576_v61, %v568_v60 }
 0xa27   :  { %1855 = vtanh.f32 %v578_v62  ;;  %v596_v63 = vsub.f32 %v578_v62, %v566_v14 }
 0xa28   :  { %v587_v3 = vpop.permute.xlu1 %586 }
 0xa29   :  { %598 = vrot.lane.b32.xlu1 %v596_v63, %s1893_s16 }
 0xa31   :  { %v1856_v0 = vpop.eup %1855 }
 0xa32   :  { %581 = vrot.lane.b32.xlu0 %v1856_v0, %s1892_s15 }
 0xa9b   :  { %v599_v6 = vpop.permute.xlu1 %598 }
 0xa9c   :  { %v601_v7 = vmul.f32 %v599_v6, %v233_v4 }
 0xa9e   :  { %v602_v10 = vadd.f32 %v601_v7, %v511_v39  ;;  %v235_v7 = vld [vmem:[%s2308_s1 + $0x28] sm:$0xff] }
 0xaa0   :  { %656 = vrot.lane.b32.xlu1 %v602_v10, %s1892_s15 }
 0xaa4   :  { %v582_v11 = vpop.permute.xlu0 %581 }
 0xaa5   :  { %v584_v17 = vmul.f32 %v1854_v57, %v582_v11 }
 0xaa7   :  { %v589_v18 = vsub.f32 %v584_v17, %v587_v3 }
 0xaa9   :  { %591 = vrot.lane.b32.xlu0 %v589_v18, %s1894_s19 }
 0xb12   :  { %v657_v13 = vpop.permute.xlu1 %656 }
 0xb1b   :  { %v592_v19 = vpop.permute.xlu0 %591 }
 0xb1c   :  { %v594_v20 = vmul.f32 %v592_v19, %v233_v4 }
 0xb1e   :  { %v595_v21 = vadd.f32 %v594_v20, %v504_v45 }
 0xb20   :  { %v603_v22 = vpack.c.bf16 %v595_v21, %v595_v21 }
 0xb22   :  { %1654 = vmatmul.mubr.msk.bf16.vlgmr.msra.gmra.mrb[12].mxu0 %vm152_vm1, %v603_v22 }
 0xb23   :  { %1666 = vmatpush3.bf16.msra.mxu0 %v1944_v2  ;;  %1669 = vmatprep.mubr.msk.bf16.mxu0 %vm1890_vm0, %v1889_v1 }
 0xb24   :  { %1667 = vmatprep.subr.bf16.mxu0 %v1889_v1 }
 0xb27   :  { %1668 = vmatpush3.bf16.msra.mxu0 %v1953_v5 }
 0xb28   :  { %1681 = vmatprep.subr.bf16.mxu0 %v1889_v1 }
 0xbf5   :  { %v641_v24 = vpop.f32.mrb[12].mxu0 }
 0xbf6   :  { %v647_v25 = vadd.f32 %v641_v24, %v216_v23  ;;  %v1655_v26 = vpop.f32.mrb[13].mxu0 }
 0xbf7   :  { %v644_v27 = vpop.f32.mrb[14].mxu0 }
 0xbf8   :  { %1857 = vtanh.f32 %v647_v25  ;;  %v1656_v28 = vpop.f32.mrb[15].mxu0  ;;  %v1486_v9 = vmul.f32 -1.442695, %v647_v25  ;;  %v224_v25 = vadd.f32 %v2031_v12, %v1980_v8 }
 0xbfa   :  { %1859 = vpow2.f32 %v1486_v9 }
 0xc02   :  { %v1858_v29 = vpop.eup %1857 }
 0xc03   :  { %661 = vrot.lane.b32.xlu0 %v1858_v29, %s1892_s15 }
 0xc04   :  { %v1860_v30 = vpop.eup %1859 }
 0xc05   :  { %v651_v31 = vadd.f32 1.0, %v1860_v30 }
 0xc07   :  { %1861 = vrcp.f32 %v651_v31 }
 0xc11   :  { %v1862_v32 = vpop.eup %1861 }
 0xc12   :  { %v659_v35 = vmul.f32 %v1862_v32, %v657_v13 }
 0xc75   :  { %v662_v33 = vpop.permute.xlu0 %661 }
 0xc76   :  { %v664_v34 = vmul.f32 %v1862_v32, %v662_v33 }
 0xc78   :  { %666 = vrot.lane.b32.xlu0 %v664_v34, %s1892_s15 }
 0xc7c   :  { %677 = vrot.lane.b32.xlu0 %v595_v21, %s1894_s19 }
 0xcea   :  { %v667_v36 = vpop.permute.xlu0 %666 }
 0xceb   :  { %v669_v37 = vadd.f32 %v667_v36, %v659_v35 }
 0xced   :  { %1863 = vtanh.f32 %v669_v37  ;;  %v687_v38 = vsub.f32 %v669_v37, %v657_v13 }
 0xcee   :  { %v678_v40 = vpop.permute.xlu0 %677 }
 0xcef   :  { %689 = vrot.lane.b32.xlu0 %v687_v38, %s1893_s16 }
 0xcf7   :  { %v1864_v39 = vpop.eup %1863 }
 0xcf8   :  { %672 = vrot.lane.b32.xlu1 %v1864_v39, %s1892_s15 }
 0xd61   :  { %v690_v42 = vpop.permute.xlu0 %689 }
 0xd62   :  { %v692_v43 = vmul.f32 %v690_v42, %v234_v41  ;;  %v236_v42 = vld [vmem:[%s2308_s1 + $0x30] sm:$0xff] }
 0xd64   :  { %v693_v44 = vadd.f32 %v692_v43, %v602_v10 }
 0xd66   :  { %747 = vrot.lane.b32.xlu0 %v693_v44, %s1892_s15 }
 0xd6a   :  { %v673_v45 = vpop.permute.xlu1 %672 }
 0xd6b   :  { %v675_v46 = vmul.f32 %v1862_v32, %v673_v45 }
 0xd6d   :  { %v680_v47 = vsub.f32 %v675_v46, %v678_v40 }
 0xd6f   :  { %682 = vrot.lane.b32.xlu1 %v680_v47, %s1894_s19 }
 0xdd8   :  { %v748_v16 = vpop.permute.xlu0 %747 }
 0xde1   :  { %v683_v48 = vpop.permute.xlu1 %682 }
 0xde2   :  { %v685_v49 = vmul.f32 %v683_v48, %v234_v41 }
 0xde4   :  { %v686_v50 = vadd.f32 %v685_v49, %v595_v21 }
 0xde6   :  { %v694_v51 = vpack.c.bf16 %v686_v50, %v686_v50 }
 0xde8   :  { %1662 = vmatmul.mubr.msk.bf16.vlgmr.msra.gmra.mrb[12].mxu1 %vm152_vm1, %v694_v51 }
 0xde9   :  { %1674 = vmatpush3.bf16.msra.mxu1 %v1944_v2  ;;  %1677 = vmatprep.mubr.msk.bf16.mxu1 %vm1890_vm0, %v1889_v1 }
 0xdea   :  { %1675 = vmatprep.subr.bf16.mxu1 %v1889_v1 }
 0xded   :  { %1676 = vmatpush3.bf16.msra.mxu1 %v1953_v5 }
 0xdee   :  { %1689 = vmatprep.subr.bf16.mxu1 %v1889_v1 }
 0xebb   :  { %v732_v53 = vpop.f32.mrb[12].mxu1 }
 0xebc   :  { %v738_v54 = vadd.f32 %v732_v53, %v219_v52  ;;  %v1663_v55 = vpop.f32.mrb[13].mxu1  ;;  %v227_v53 = vadd.f32 %v2035_v15, %v1980_v8 }
 0xebd   :  { %v735_v56 = vpop.f32.mrb[14].mxu1 }
 0xebe   :  { %1865 = vtanh.f32 %v738_v54  ;;  %v1664_v57 = vpop.f32.mrb[15].mxu1  ;;  %v1488_v2 = vmul.f32 -1.442695, %v738_v54 }
 0xec0   :  { %1867 = vpow2.f32 %v1488_v2 }
 0xec8   :  { %v1866_v58 = vpop.eup %1865 }
 0xec9   :  { %752 = vrot.lane.b32.xlu1 %v1866_v58, %s1892_s15 }
 0xeca   :  { %v1868_v59 = vpop.eup %1867 }
 0xecb   :  { %v742_v14 = vadd.f32 1.0, %v1868_v59 }
 0xecd   :  { %1869 = vrcp.f32 %v742_v14 }
 0xed7   :  { %v1870_v5 = vpop.eup %1869 }
 0xed8   :  { %v750_v62 = vmul.f32 %v1870_v5, %v748_v16 }
 0xf3b   :  { %v753_v60 = vpop.permute.xlu1 %752 }
 0xf3c   :  { %v755_v61 = vmul.f32 %v1870_v5, %v753_v60 }
 0xf3e   :  { %757 = vrot.lane.b32.xlu1 %v755_v61, %s1892_s15 }
 0xf42   :  { %768 = vrot.lane.b32.xlu1 %v686_v50, %s1894_s19 }
 0xfb0   :  { %v758_v63 = vpop.permute.xlu1 %757 }
 0xfb1   :  { %v760_v0 = vadd.f32 %v758_v63, %v750_v62 }
 0xfb3   :  { %1871 = vtanh.f32 %v760_v0  ;;  %v778_v3 = vsub.f32 %v760_v0, %v748_v16  ;;  %v1791_v0 = vld [vmem:[%s2305_s2 + $0x20] sm:$0xff]  }
 0xfb4   :  { %v769_v6 = vpop.permute.xlu1 %768 }
 0xfb5   :  { %780 = vrot.lane.b32.xlu1 %v778_v3, %s1893_s16 }
 0xfbd   :  { %v1872_v4 = vpop.eup %1871 }
 0xfbe   :  { %763 = vrot.lane.b32.xlu0 %v1872_v4, %s1892_s15  ;;  %v1792_v4 = vld [vmem:[%s2305_s2 + $0x28] sm:$0xff]  }
0x1027   :  { %v781_v10 = vpop.permute.xlu1 %780 }
0x1028   :  { %v783_v11 = vmul.f32 %v781_v10, %v235_v7  ;;  %v1795_v10 = vld [vmem:[%s2305_s2 + $0x38] sm:$0xff]  }
0x102a   :  { %v784_v17 = vadd.f32 %v783_v11, %v693_v44 }
0x102c   :  { %838 = vrot.lane.b32.xlu1 %v784_v17, %s1892_s15 }
0x1030   :  { %v764_v18 = vpop.permute.xlu0 %763 }
0x1031   :  { %v766_v19 = vmul.f32 %v1870_v5, %v764_v18 }
0x1033   :  { %v771_v20 = vsub.f32 %v766_v19, %v769_v6  ;;  %v1793_v6 = vld [vmem:[%s2305_s2 + $0x30] sm:$0xff]   ;;  %v1797_v19 = vld [vmem:[%s2305_s2 + $0x40] sm:$0xff]  }
0x1035   :  { %773 = vrot.lane.b32.xlu0 %v771_v20, %s1894_s19  ;;  %v1799_v20 = vld [vmem:[%s2305_s2 + $0x48] sm:$0xff]  }
0x109e   :  { %v839_v12 = vpop.permute.xlu1 %838 }
0x10a7   :  { %v774_v21 = vpop.permute.xlu0 %773 }
0x10a8   :  { %v776_v22 = vmul.f32 %v774_v21, %v235_v7  ;;  %v1801_v21 = vld [vmem:[%s2305_s2 + $0x50] sm:$0xff]  }
0x10aa   :  { %v777_v23 = vadd.f32 %v776_v22, %v686_v50  ;;  %v1803_v22 = vld [vmem:[%s2305_s2 + $0x58] sm:$0xff]  }
0x10ac   :  { %v785_v24 = vpack.c.bf16 %v777_v23, %v777_v23 }
0x10ae   :  { %1670 = vmatmul.mubr.msk.bf16.vlgmr.msra.gmra.mrb[16].mxu0 %vm152_vm1, %v785_v24 }
0x10af   :  { %1685 = vmatprep.mubr.msk.bf16.mxu0 %vm1890_vm0, %v1889_v1  ;;  %1682 = vmatpush3.bf16.msra.mxu0 %v1791_v0  ;;  %v1815_v0 = vld [vmem:[%s2305_s2 + $0xe0] sm:$0xff]  }
0x10b0   :  { %1683 = vmatprep.subr.bf16.mxu0 %v1889_v1 }
0x10b3   :  { %1684 = vmatpush3.bf16.msra.mxu0 %v1792_v4  ;;  %v1817_v4 = vld [vmem:[%s2305_s2 + $0xf0] sm:$0xff]  }
0x10b4   :  { %1709 = vmatprep.subr.bf16.mxu0 %v1889_v1 }
0x1181   :  { %v823_v26 = vpop.f32.mrb[16].mxu0 }
0x1182   :  { %v829_v27 = vadd.f32 %v823_v26, %v224_v25  ;;  %v1671_v28 = vpop.f32.mrb[17].mxu0 }
0x1183   :  { %v826_v29 = vpop.f32.mrb[18].mxu0 }
0x1184   :  { %1873 = vtanh.f32 %v829_v27  ;;  %v1672_v9 = vpop.f32.mrb[19].mxu0  ;;  %v1490_v31 = vmul.f32 -1.442695, %v829_v27  ;;  %v1794_v27 = vld [vmem:[%s2305_s2 + $0x70] sm:$0xff]   ;;  %v1796_v29 = vld [vmem:[%s2305_s2 + $0x78] sm:$0xff]  }
0x1185   :  { %v1798_v9 = vld [vmem:[%s2305_s2 + $0x80] sm:$0xff]  }
0x1186   :  { %1875 = vpow2.f32 %v1490_v31  ;;  %v1802_v31 = vld [vmem:[%s2305_s2 + $0x90] sm:$0xff]  }
0x118e   :  { %v1874_v30 = vpop.eup %1873 }
0x118f   :  { %843 = vrot.lane.b32.xlu0 %v1874_v30, %s1892_s15  ;;  %v1800_v30 = vld [vmem:[%s2305_s2 + $0x88] sm:$0xff]  }
0x1190   :  { %v1876_v32 = vpop.eup %1875 }
0x1191   :  { %v833_v33 = vadd.f32 1.0, %v1876_v32  ;;  %v1804_v32 = vld [vmem:[%s2305_s2 + $0x98] sm:$0xff]  }
0x1193   :  { %1877 = vrcp.f32 %v833_v33  ;;  %v1805_v33 = vld [vmem:[%s2305_s2 + $0x60] sm:$0xff]  }
0x119d   :  { %v1878_v34 = vpop.eup %1877 }
0x119e   :  { %v841_v36 = vmul.f32 %v1878_v34, %v839_v12 }
0x1201   :  { %v844_v13 = vpop.permute.xlu0 %843 }
0x1202   :  { %v846_v35 = vmul.f32 %v1878_v34, %v844_v13  ;;  %v1807_v13 = vld [vmem:[%s2305_s2 + $0x68] sm:$0xff]  }
0x1204   :  { %848 = vrot.lane.b32.xlu0 %v846_v35, %s1892_s15  ;;  %v1808_v35 = vld [vmem:[%s2305_s2 + $0xa8] sm:$0xff]  }
0x1208   :  { %859 = vrot.lane.b32.xlu0 %v777_v23, %s1894_s19 }
0x1276   :  { %v849_v37 = vpop.permute.xlu0 %848 }
0x1277   :  { %v851_v38 = vadd.f32 %v849_v37, %v841_v36  ;;  %v1210_v36 = vld [vmem:[%s2310_s6] sm:$0xff] }
0x1278   :  { %v1211_v37 = vadd.s32 8, %v1210_v36 }
0x1279   :  { %1879 = vtanh.f32 %v851_v38  ;;  %v869_v39 = vsub.f32 %v851_v38, %v839_v12  ;;  %v1205_v12 = vld [vmem:[%s2309_s5] sm:$0xff] }
0x127a   :  { %v860_v41 = vpop.permute.xlu0 %859  ;;  %v1493_v38 = vld [vmem:[%s2307_s3 + $0x1] ss:$0 sm:$0xff] }
0x127b   :  { %871 = vrot.lane.b32.xlu0 %v869_v39, %s1893_s16 }
0x1283   :  { %v1880_v40 = vpop.eup %1879 }
0x1284   :  { %854 = vrot.lane.b32.xlu1 %v1880_v40, %s1892_s15 }
0x12ed   :  { %v872_v43 = vpop.permute.xlu0 %871 }
0x12ee   :  { %v874_v44 = vmul.f32 %v872_v43, %v236_v42 }
0x12f0   :  { %v875_v45 = vadd.f32 %v874_v44, %v784_v17  ;;  %v1023_v44 = vld [vmem:[%s2311_s4] sm:$0xff] }
0x12f2   :  { %929 = vrot.lane.b32.xlu0 %v875_v45, %s1892_s15 }
0x12f6   :  { %v855_v46 = vpop.permute.xlu1 %854 }
0x12f7   :  { %v857_v47 = vmul.f32 %v1878_v34, %v855_v46  ;;  %v1806_v34 = vld [vmem:[%s2305_s2 + $0xa0] sm:$0xff]  }
0x12f9   :  { %v862_v48 = vsub.f32 %v857_v47, %v860_v41 }
0x12fb   :  { %864 = vrot.lane.b32.xlu1 %v862_v48, %s1894_s19 }
0x1364   :  { %v930_v8 = vpop.permute.xlu0 %929 }
0x136d   :  { %v865_v49 = vpop.permute.xlu1 %864 }
0x136e   :  { %v867_v50 = vmul.f32 %v865_v49, %v236_v42  ;;  %v1809_v49 = vld [vmem:[%s2305_s2 + $0xb0] sm:$0xff]  }
0x1370   :  { %v868_v51 = vadd.f32 %v867_v50, %v777_v23  ;;  %v237_v23 = vld [vmem:[%s2308_s1 + $0x38] sm:$0xff] }
0x1371   :  { %v1810_v50 = vld [vmem:[%s2305_s2 + $0xb8] sm:$0xff]  }
0x1372   :  { %v876_v52 = vpack.c.bf16 %v868_v51, %v868_v51 }
0x1374   :  { %1678 = vmatmul.mubr.msk.bf16.vlgmr.msra.gmra.mrb[16].mxu1 %vm152_vm1, %v876_v52  ;;  %v1812_v52 = vld [vmem:[%s2305_s2 + $0xc8] sm:$0xff]  }
0x1375   :  { %1705 = vmatprep.mubr.msk.bf16.mxu1 %vm1890_vm0, %v1889_v1  ;;  %1690 = vmatpush3.bf16.msra.mxu1 %v1793_v6  ;;  %v1818_v6 = vld [vmem:[%s2305_s2 + $0xf8] sm:$0xff]  }
0x1376   :  { %1691 = vmatprep.subr.bf16.mxu1 %v1889_v1 }
0x1379   :  { %1692 = vmatpush3.bf16.msra.mxu1 %v1795_v10  ;;  %v1820_v10 = vld [vmem:[%s2305_s2 + $0x108] sm:$0xff]  }
0x137a   :  { %1693 = vmatprep.subr.bf16.mxu1 %v1889_v1 }
0x137d   :  { %1694 = vmatpush3.bf16.msra.mxu1 %v1797_v19 }
0x137e   :  { %1695 = vmatprep.subr.bf16.mxu1 %v1889_v1 }
0x1381   :  { %1696 = vmatpush3.bf16.msra.mxu1 %v1799_v20 }
0x1382   :  { %1697 = vmatprep.subr.bf16.mxu1 %v1889_v1 }
0x1385   :  { %1698 = vmatpush3.bf16.msra.mxu1 %v1801_v21 }
0x1386   :  { %1699 = vmatprep.subr.bf16.mxu1 %v1889_v1 }
0x1389   :  { %1700 = vmatpush3.bf16.msra.mxu1 %v1803_v22 }
0x138a   :  { %1701 = vmatprep.subr.bf16.mxu1 %v1889_v1 }
0x138d   :  { %1702 = vmatpush3.bf16.msra.mxu1 %v1805_v33 }
0x138e   :  { %1703 = vmatprep.subr.bf16.mxu1 %v1889_v1 }
0x1391   :  { %1704 = vmatpush3.bf16.msra.mxu1 %v1807_v13 }
0x1392   :  { %1729 = vmatprep.subr.bf16.mxu1 %v1889_v1 }
0x1447   :  { %v914_v54 = vpop.f32.mrb[16].mxu1 }
0x1448   :  { %v920_v55 = vadd.f32 %v914_v54, %v227_v53  ;;  %v1679_v56 = vpop.f32.mrb[17].mxu1  ;;  %v1813_v53 = vld [vmem:[%s2305_s2 + $0xd0] sm:$0xff]   ;;  %v1814_v54 = vld [vmem:[%s2305_s2 + $0xd8] sm:$0xff]  }
0x1449   :  { %v917_v57 = vpop.f32.mrb[18].mxu1 }
0x144a   :  { %1881 = vtanh.f32 %v920_v55  ;;  %v1680_v58 = vpop.f32.mrb[19].mxu1  ;;  %v1492_v59 = vmul.f32 -1.442695, %v920_v55  ;;  %v1203_v55 = vlaneseq }
0x144c   :  { %1883 = vpow2.f32 %v1492_v59  ;;  %v1204_v56 = vand.u32 127, %v1203_v55 }
0x1454   :  { %v1882_v2 = vpop.eup %1881 }
0x1455   :  { %934 = vrot.lane.b32.xlu1 %v1882_v2, %s1892_s15 }
0x1456   :  { %v1884_v14 = vpop.eup %1883 }
0x1457   :  { %v924_v5 = vadd.f32 1.0, %v1884_v14 }
0x1459   :  { %1885 = vrcp.f32 %v924_v5 }
0x1463   :  { %v1886_v60 = vpop.eup %1885 }
0x1464   :  { %v932_v15 = vmul.f32 %v1886_v60, %v930_v8 }
0x14c7   :  { %v935_v61 = vpop.permute.xlu1 %934 }
0x14c8   :  { %v937_v16 = vmul.f32 %v1886_v60, %v935_v61 }
0x14ca   :  { %939 = vrot.lane.b32.xlu1 %v937_v16, %s1892_s15 }
0x14ce   :  { %950 = vrot.lane.b32.xlu1 %v868_v51, %s1894_s19 }
0x14d2   :  { %1207 = vperm.xlu1 %1781, %v1205_v12  }
0x153c   :  { %v940_v62 = vpop.permute.xlu1 %939 }
0x153d   :  { %v942_v63 = vadd.f32 %v940_v62, %v932_v15 }
0x153f   :  { %1887 = vtanh.f32 %v942_v63 }
0x1540   :  { %v951_v17 = vpop.permute.xlu1 %950 }
0x1549   :  { %v1888_v3 = vpop.eup %1887 }
0x154a   :  { %945 = vrot.lane.b32.xlu0 %v1888_v3, %s1892_s15  ;;  %v1816_v3 = vld [vmem:[%s2305_s2 + $0xe8] sm:$0xff]  }
0x1551   :  { %v1208_v57 = vpop.permute.xlu1 %1207 }
0x1552   :  { %vm1209_vm3 = vcmp.eq.s32.totalorder %v1204_v56, %v1208_v57 }
0x15bc   :  { %v946_v7 = vpop.permute.xlu0 %945 }
0x15bd   :  { %v948_v11 = vmul.f32 %v1886_v60, %v946_v7  ;;  %v1819_v7 = vld [vmem:[%s2305_s2 + $0x100] sm:$0xff]  }
0x15bf   :  { %v953_v18 = vsub.f32 %v948_v11, %v951_v17  ;;  %v1821_v11 = vld [vmem:[%s2305_s2 + $0x110] sm:$0xff]   ;;  %v1822_v17 = vld [vmem:[%s2305_s2 + $0x118] sm:$0xff]  }
0x15c1   :  { %955 = vrot.lane.b32.xlu0 %v953_v18, %s1894_s19  ;;  %v1514_v18 = vld [vmem:[%s2307_s3 + $0x2] ss:$0 sm:$0xff] }
0x15c5   :  { %1213 = vperm.xlu0 %1782, %v1211_v37  }
0x1633   :  { %v956_v24 = vpop.permute.xlu0 %955 }
0x1634   :  { %v958_v25 = vmul.f32 %v956_v24, %v237_v23 }
0x1636   :  { %v959_v26 = vadd.f32 %v958_v25, %v868_v51  ;;  %v1811_v51 = vld [vmem:[%s2305_s2 + $0xc0] sm:$0xff]  }
0x1638   :  { %v960_v28 = vpack.c.bf16 %v959_v26, %v959_v26 }
0x163a   :  { %1686 = vmatmul.mubr.msk.bf16.vlgmr.msra.gmra.mrb[20].mxu0 %vm152_vm1, %v960_v28  ;;  %v1824_v28 = vld [vmem:[%s2305_s2 + $0x128] sm:$0xff]  }
0x163b   :  { %1710 = vmatpush3.bf16.msra.mxu0 %v1794_v27  ;;  %1725 = vmatprep.mubr.msk.bf16.mxu0 %vm1890_vm0, %v1889_v1  ;;  %v1823_v27 = vld [vmem:[%s2305_s2 + $0x120] sm:$0xff]  }
0x163c   :  { %1711 = vmatprep.subr.bf16.mxu0 %v1889_v1 }
0x163f   :  { %1712 = vmatpush3.bf16.msra.mxu0 %v1796_v29  ;;  %v1516_v29 = vld [vmem:[%s2307_s3 + $0x3] ss:$0 sm:$0xff] }
0x1640   :  { %1713 = vmatprep.subr.bf16.mxu0 %v1889_v1 }
0x1643   :  { %1714 = vmatpush3.bf16.msra.mxu0 %v1798_v9 }
0x1644   :  { %1715 = vmatprep.subr.bf16.mxu0 %v1889_v1  ;;  %v1214_v58 = vpop.permute.xlu0 %1213 }
0x1645   :  { %vm1215_vm4 = vcmp.eq.s32.totalorder %v1204_v56, %v1214_v58 }
0x1646   :  { %vm1216_vm5 = vmor %vm1209_vm3, %vm1215_vm4 }
0x1647   :  { %1716 = vmatpush3.bf16.msra.mxu0 %v1800_v30  ;;  %v1513_v2 = vsel %vm1216_vm5, 1.0, %v1889_v1 }
0x1648   :  { %1717 = vmatprep.subr.bf16.mxu0 %v1889_v1  ;;  %v1219_v16 = vpack.c.bf16 %v1513_v2, %v1513_v2 }
0x164b   :  { %1718 = vmatpush3.bf16.msra.mxu0 %v1802_v31 }
0x164c   :  { %1719 = vmatprep.subr.bf16.mxu0 %v1889_v1 }
0x164f   :  { %1720 = vmatpush3.bf16.msra.mxu0 %v1804_v32 }
0x1650   :  { %1721 = vmatprep.subr.bf16.mxu0 %v1889_v1 }
0x1653   :  { %1722 = vmatpush3.bf16.msra.mxu0 %v1806_v34 }
0x1654   :  { %1723 = vmatprep.subr.bf16.mxu0 %v1889_v1 }
0x1657   :  { %1724 = vmatpush3.bf16.msra.mxu0 %v1808_v35 }
0x1658   :  { %1735 = vmatprep.subr.bf16.mxu0 %v1889_v1 }
0x170d   :  { %v1014_v39 = vpop.f32.mrb[20].mxu0 }
0x170e   :  { %v1015_v40 = vadd.f32 %v1493_v38, %v1014_v39  ;;  %v1687_v41 = vpop.f32.mrb[21].mxu0 }
0x170f   :  { %v1017_v42 = vpop.f32.mrb[22].mxu0 }
0x1710   :  { %vm1020_vm2 = vcmp.ge.f32.partialorder %v1015_v40, 0.0  ;;  %v1021_v43 = vmul.f32 0.1, %v1015_v40  ;;  %v1688_v45 = vpop.f32.mrb[23].mxu0 }
0x1712   :  { %v1022_v46 = vsel %vm1020_vm2, %v1015_v40, %v1021_v43 }
0x1713   :  { %v1024_v47 = vadd.f32 %v1023_v44, %v1022_v46 }
0x1715   :  { %v1025_v48 = vpack.c.bf16 %v1024_v47, %v1024_v47 }
0x1717   :  { %1706 = vmatmul.mubr.bf16.vlgmr.msra.gmra.mrb[20].mxu1 %v1025_v48  ;;  %1726 = vmatmul.mubr.bf16.vlgmr.msra.gmra.mrb[24].mxu0 %v1025_v48 }
0x1718   :  { %1731 = vmatprep.mubr.msk.bf16.mxu1 %vm1890_vm0, %v1889_v1  ;;  %1751 = vmatprep.mubr.msk.bf16.mxu0 %vm1890_vm0, %v1889_v1 }
0x1719   :  { %1736 = vmatpush3.bf16.msra.mxu0 %v1809_v49 }
0x171a   :  { %1737 = vmatprep.subr.bf16.mxu0 %v1889_v1 }
0x171d   :  { %1738 = vmatpush3.bf16.msra.mxu0 %v1810_v50 }
0x171e   :  { %1739 = vmatprep.subr.bf16.mxu0 %v1889_v1 }
0x1721   :  { %1740 = vmatpush3.bf16.msra.mxu0 %v1811_v51 }
0x1722   :  { %1741 = vmatprep.subr.bf16.mxu0 %v1889_v1 }
0x1725   :  { %1742 = vmatpush3.bf16.msra.mxu0 %v1812_v52 }
0x1726   :  { %1743 = vmatprep.subr.bf16.mxu0 %v1889_v1 }
0x1729   :  { %1744 = vmatpush3.bf16.msra.mxu0 %v1813_v53 }
0x172a   :  { %1745 = vmatprep.subr.bf16.mxu0 %v1889_v1 }
0x172d   :  { %1746 = vmatpush3.bf16.msra.mxu0 %v1814_v54 }
0x172e   :  { %1747 = vmatprep.subr.bf16.mxu0 %v1889_v1 }
0x1731   :  { %1748 = vmatpush3.bf16.msra.mxu0 %v1815_v0 }
0x1732   :  { %1749 = vmatprep.subr.bf16.mxu0 %v1889_v1 }
0x1735   :  { %1750 = vmatpush3.bf16.msra.mxu0 %v1816_v3 }
0x17ea   :  { %v1196_v59 = vpop.f32.mrb[24].mxu0  ;;  %v1108_v14 = vpop.f32.mrb[20].mxu1 }
0x17eb   :  { %v1202_v5 = vpack.c.bf16 %v1196_v59, %v1108_v14  ;;  %v1707_v60 = vpop.f32.mrb[21].mxu1  ;;  %v1727_v61 = vpop.f32.mrb[25].mxu0 }
0x17ec   :  { %v1111_v8 = vpop.f32.mrb[22].mxu1  ;;  %v1199_v15 = vpop.f32.mrb[26].mxu0 }
0x17ed   :  { %v1708_v62 = vpop.f32.mrb[23].mxu1  ;;  %v1728_v63 = vpop.f32.mrb[27].mxu0  ;;  %1730 = vmatpush3.bf16.msra.mxu1 %v1202_v5 }
0x17ee   :  { %1755 = vmatprep.subr.bf16.mxu1 %v1889_v1 }
0x17f0   :  { %1732 = vmatmul.mubr.msk.bf16.vlgmr.msra.gmra.mrb[24].mxu1 %vm1224_vm6, %v1219_v16 }
0x17f1   :  { %1771 = vmatprep.mubr.msk.bf16.mxu1 %vm1890_vm0, %v1889_v1  ;;  %1756 = vmatpush3.bf16.msra.mxu1 %v1817_v4 }
0x17f2   :  { %1757 = vmatprep.subr.bf16.mxu1 %v1889_v1 }
0x17f5   :  { %1758 = vmatpush3.bf16.msra.mxu1 %v1818_v6 }
0x17f6   :  { %1759 = vmatprep.subr.bf16.mxu1 %v1889_v1 }
0x17f9   :  { %1760 = vmatpush3.bf16.msra.mxu1 %v1819_v7 }
0x17fa   :  { %1761 = vmatprep.subr.bf16.mxu1 %v1889_v1 }
0x17fd   :  { %1762 = vmatpush3.bf16.msra.mxu1 %v1820_v10 }
0x17fe   :  { %1763 = vmatprep.subr.bf16.mxu1 %v1889_v1 }
0x1801   :  { %1764 = vmatpush3.bf16.msra.mxu1 %v1821_v11 }
0x1802   :  { %1765 = vmatprep.subr.bf16.mxu1 %v1889_v1 }
0x1805   :  { %1766 = vmatpush3.bf16.msra.mxu1 %v1822_v17 }
0x1806   :  { %1767 = vmatprep.subr.bf16.mxu1 %v1889_v1 }
0x1809   :  { %1768 = vmatpush3.bf16.msra.mxu1 %v1823_v27 }
0x180a   :  { %1769 = vmatprep.subr.bf16.mxu1 %v1889_v1  ;;  %v1525_v1 = vld [vmem:[%s2307_s3 + $0x4] ss:$0 sm:$0xff] }
0x180d   :  { %1770 = vmatpush3.bf16.msra.mxu1 %v1824_v28 }
0x18c3   :  { %v1262_v19 = vpop.f32.mrb[24].mxu1 }
0x18c4   :  { %v1263_v20 = vadd.f32 %v1514_v18, %v1262_v19  ;;  %v1733_v21 = vpop.f32.mrb[25].mxu1 }
0x18c5   :  { %v1265_v22 = vpop.f32.mrb[26].mxu1 }
0x18c6   :  { %vm1268_vm7 = vcmp.ge.f32.partialorder %v1263_v20, 0.0  ;;  %v1269_v23 = vmul.f32 0.1, %v1263_v20  ;;  %v1734_v24 = vpop.f32.mrb[27].mxu1 }
0x18c8   :  { %v1270_v25 = vsel %vm1268_vm7, %v1263_v20, %v1269_v23 }
0x18c9   :  { %v1271_v26 = vpack.c.bf16 %v1270_v25, %v1270_v25 }
0x18cb   :  { %1752 = vmatmul.mubr.bf16.vlgmr.msra.gmra.mrb[28].mxu0 %v1271_v26 }
0x199e   :  { %v1358_v9 = vpop.f32.mrb[28].mxu0 }
0x199f   :  { %v1359_v30 = vadd.f32 %v1516_v29, %v1358_v9  ;;  %v1753_v31 = vpop.f32.mrb[29].mxu0 }
0x19a0   :  { %v1361_v32 = vpop.f32.mrb[30].mxu0 }
0x19a1   :  { %vm1364_vm8 = vcmp.ge.f32.partialorder %v1359_v30, 0.0  ;;  %v1365_v33 = vmul.f32 0.1, %v1359_v30  ;;  %v1754_v34 = vpop.f32.mrb[31].mxu0 }
0x19a3   :  { %v1366_v13 = vsel %vm1364_vm8, %v1359_v30, %v1365_v33 }
0x19a4   :  { %v1367_v35 = vpack.c.bf16 %v1366_v13, %v1366_v13 }
0x19a6   :  { %1772 = vmatmul.mubr.bf16.vlgmr.msra.gmra.mrb[28].mxu1 %v1367_v35 }
0x1a79   :  { %v1454_v12 = vpop.f32.mrb[28].mxu1 }
0x1a7a   :  { %v1455_v36 = vadd.f32 %v1525_v1, %v1454_v12  ;;  %v1773_v37 = vpop.f32.mrb[29].mxu1 }
0x1a7b   :  { %v1457_v38 = vpop.f32.mrb[30].mxu1 }
0x1a7c   :  { %1460 = vst [vmem:[%s2312_s7] sm:$0xff] %v1455_v36  ;;  %v1774_v39 = vpop.f32.mrb[31].mxu1 }

</bundles_post_ra>
